<compile_context>
chip_gen: v7x
topology: tpu7x:2x2x1
jax: 0.10.0
libtpu: 0.0.40
codegen_flags: <defaults>
</compile_context>

<pallas_src>
import functools

import jax
import jax.numpy as jnp
from jax import lax
from jax.experimental import pallas as pl
from jax.experimental.pallas import tpu as pltpu


def _num_gates(rnn_type):
    return {"LSTM": 4, "GRU": 3}.get(rnn_type, 1)


# Below this sequence length the whole recurrence runs register-resident in a
# single gridless kernel (fully unrolled, gi held as a value).
_SMALL_SEQ_MAX = 128
# Keep W_hh hoisted into vregs only while it is a handful of vregs; beyond
# this the (cheap) per-step vld beats spill traffic across the unrolled loop.
_WHH_HOIST_BYTES = 96 * 1024


# --------------------------------------------------------------------------
# Small-sequence path: gridless, everything register-resident.
# --------------------------------------------------------------------------
def _make_small_kernel(rnn_type, seq_len, n_features, hidden):
    H = hidden
    G = _num_gates(rnn_type)
    GH = G * H

    def kernel(x_ref, wih_ref, whh_ref, bih_ref, bhh_ref, hn_ref):
        # ---------- one-time precompute (off the serial critical path) -----
        bih = bih_ref[...]                          # (1, GH)
        bhh = bhh_ref[...]                          # (1, GH)
        if rnn_type == "GRU":
            # Fold b_hh only for the r,z gate columns; the n-gate hidden bias
            # must remain inside r * (W_hn h + b_hn) to match PyTorch.
            lane = lax.broadcasted_iota(jnp.int32, (1, GH), 1)
            b_fold = bih + jnp.where(lane < 2 * H, bhh, jnp.float32(0.0))
            bhh_n = bhh[:, 2 * H:3 * H]             # (1, H)
        else:
            b_fold = bih + bhh
            bhh_n = None

        # Batched input-side pre-activations for every timestep, held as a
        # plain value (a couple of vregs) -> no VMEM scratch round trip.
        if n_features == 1:
            # K=1 matmul is a degenerate MXU op; a VPU broadcast multiply does
            # it directly: (S,1) * (1,GH) -> (S,GH).
            gi = x_ref[...] * wih_ref[...] + b_fold
        else:
            gi = jnp.dot(x_ref[...], wih_ref[...],
                         preferred_element_type=jnp.float32) + b_fold

        # Hoist the recurrent weight once (small by construction on this path).
        whh = whh_ref[...]                          # (H, GH)

        # ---------- serial recurrence: state in vregs, fully unrolled ------
        # TODO(synk): for H <= ~32 a VPU/XLU (broadcast-mul + sublane-reduce)
        # formulation of h @ W_hh may beat the M=1 MXU matmul on v5e/v6e.
        h = jnp.zeros((1, H), jnp.float32)
        if rnn_type == "LSTM":
            c = jnp.zeros((1, H), jnp.float32)
            for t in range(seq_len):                # static slices of gi
                gh = jnp.dot(h, whh, preferred_element_type=jnp.float32)
                g = gi[t:t + 1, :] + gh             # (1, 4H)
                sig = jax.nn.sigmoid(g)             # one EUP push: i, f, o
                tnh = jnp.tanh(g)                   # one EUP push: g gate
                c = sig[:, H:2 * H] * c + sig[:, 0:H] * tnh[:, 2 * H:3 * H]
                h = sig[:, 3 * H:4 * H] * jnp.tanh(c)
        elif rnn_type == "GRU":
            for t in range(seq_len):
                gh = jnp.dot(h, whh, preferred_element_type=jnp.float32)
                gi_t = gi[t:t + 1, :]               # (1, 3H)
                sig = jax.nn.sigmoid(gi_t + gh)     # one EUP push: r, z
                r_g = sig[:, 0:H]
                z_g = sig[:, H:2 * H]
                n_g = jnp.tanh(gi_t[:, 2 * H:3 * H]
                               + r_g * (gh[:, 2 * H:3 * H] + bhh_n))
                h = (1.0 - z_g) * n_g + z_g * h
        else:  # vanilla RNN (tanh)
            for t in range(seq_len):
                gh = jnp.dot(h, whh, preferred_element_type=jnp.float32)
                h = jnp.tanh(gi[t:t + 1, :] + gh)

        hn_ref[...] = h

    return kernel


# --------------------------------------------------------------------------
# Streaming path: lane-dense gi streamed by BlockSpec over a chunk grid,
# h/c carried in VMEM scratch across "arbitrary" grid steps.
# --------------------------------------------------------------------------
def _make_chunked_kernel(rnn_type, chunk, hidden, unroll):
    H = hidden
    G = _num_gates(rnn_type)
    GH = G * H
    hoist_whh = H * GH * 4 <= _WHH_HOIST_BYTES

    def kernel(gi_ref, whh_ref, bhh_ref, hn_ref, h_scr, *maybe_c):
        ci = pl.program_id(0)

        @pl.when(ci == 0)
        def _():
            h_scr[...] = jnp.zeros_like(h_scr)
            if rnn_type == "LSTM":
                maybe_c[0][...] = jnp.zeros_like(maybe_c[0])

        whh = whh_ref[...] if hoist_whh else None

        def hh(h):
            w = whh if hoist_whh else whh_ref[...]
            return jnp.dot(h, w, preferred_element_type=jnp.float32)

        if rnn_type == "GRU":
            bhh_n = bhh_ref[:, 2 * H:3 * H]         # (1, H)

        if rnn_type == "LSTM":
            c_scr = maybe_c[0]

            def step(t, carry):
                h, c = carry
                g = gi_ref[pl.ds(t, 1), :] + hh(h)
                sig = jax.nn.sigmoid(g)
                tnh = jnp.tanh(g)
                c_new = sig[:, H:2 * H] * c + sig[:, 0:H] * tnh[:, 2 * H:3 * H]
                h_new = sig[:, 3 * H:4 * H] * jnp.tanh(c_new)
                return h_new, c_new

            h_fin, c_fin = lax.fori_loop(0, chunk, step,
                                         (h_scr[...], c_scr[...]),
                                         unroll=unroll)
            c_scr[...] = c_fin
        elif rnn_type == "GRU":
            def step(t, h):
                gi_t = gi_ref[pl.ds(t, 1), :]
                gh = hh(h)
                sig = jax.nn.sigmoid(gi_t + gh)
                r_g = sig[:, 0:H]
                z_g = sig[:, H:2 * H]
                n_g = jnp.tanh(gi_t[:, 2 * H:3 * H]
                               + r_g * (gh[:, 2 * H:3 * H] + bhh_n))
                return (1.0 - z_g) * n_g + z_g * h

            h_fin = lax.fori_loop(0, chunk, step, h_scr[...], unroll=unroll)
        else:
            def step(t, h):
                return jnp.tanh(gi_ref[pl.ds(t, 1), :] + hh(h))

            h_fin = lax.fori_loop(0, chunk, step, h_scr[...], unroll=unroll)

        h_scr[...] = h_fin
        hn_ref[...] = h_fin

    return kernel


def _pick_chunk(seq_len, target):
    """Largest divisor of seq_len that is <= target and a multiple of 8."""
    # TODO(synk): handle ragged tails (non-divisible seq_len) with an in-kernel
    # valid-length mask instead of falling back to one full-sequence chunk.
    if seq_len <= target:
        return seq_len
    for d in range(min(target, seq_len), 7, -1):
        if seq_len % d == 0 and d % 8 == 0:
            return d
    return seq_len


@functools.partial(jax.jit, static_argnames=("rnn_type", "seq_len",
                                             "n_features", "hidden", "chunk"))
def encoder_forward(x, wih_t, whh_t, bih, bhh, *, rnn_type, seq_len,
                    n_features, hidden, chunk=None):
    """Pallas equivalent of Encoder.forward: returns (n_features, hidden)."""
    if n_features != 1:
        # hidden_n.reshape((n_features, embedding_dim)) in the PyTorch module
        # is only shape-valid for n_features == 1; fail loudly.
        raise ValueError("Encoder.forward requires n_features == 1")

    G = _num_gates(rnn_type)
    GH = G * hidden
    x2 = x.reshape(seq_len, n_features).astype(jnp.float32)

    if chunk is None and seq_len <= _SMALL_SEQ_MAX:
        vmem = pl.BlockSpec(memory_space=pltpu.MemorySpace.VMEM)
        hn = pl.pallas_call(
            _make_small_kernel(rnn_type, seq_len, n_features, hidden),
            out_shape=jax.ShapeDtypeStruct((1, hidden), jnp.float32),
            in_specs=[vmem] * 5,
            out_specs=vmem,
        )(x2, wih_t, whh_t, bih, bhh)
        return hn.reshape(n_features, hidden)

    # ---- streaming path: lane-dense gi precomputed in XLA, chunk-streamed --
    if rnn_type == "GRU":
        lane = jnp.arange(GH)[None, :]
        b_fold = bih + jnp.where(lane < 2 * hidden, bhh, 0.0)
    else:
        b_fold = bih + bhh
    gi = x2 @ wih_t + b_fold                         # (S, GH), lane-dense f32

    ck = _pick_chunk(seq_len, chunk if chunk is not None else 256)
    n_chunks = seq_len // ck

    scratch = [pltpu.VMEM((1, hidden), jnp.float32)]
    if rnn_type == "LSTM":
        scratch.append(pltpu.VMEM((1, hidden), jnp.float32))

    # Size scoped VMEM to the actual buffers (double-buffered gi chunk,
    # whh, bhh, out, state), with headroom; stay under all physical limits.
    need = 4 * (2 * ck * GH + hidden * GH + GH + 4 * hidden)
    vmem_limit = int(min(max(2 * need, 16 << 20), 32 << 20))

    hn = pl.pallas_call(
        _make_chunked_kernel(rnn_type, ck, hidden, unroll=min(8, ck)),
        out_shape=jax.ShapeDtypeStruct((1, hidden), jnp.float32),
        grid_spec=pltpu.PrefetchScalarGridSpec(
            num_scalar_prefetch=0,
            grid=(n_chunks,),
            in_specs=[pl.BlockSpec((ck, GH), lambda i: (i, 0)),
                      pl.BlockSpec((hidden, GH), lambda i: (0, 0)),
                      pl.BlockSpec((1, GH), lambda i: (0, 0))],
            out_specs=pl.BlockSpec((1, hidden), lambda i: (0, 0)),
            scratch_shapes=scratch),
        compiler_params=pltpu.CompilerParams(
            dimension_semantics=("arbitrary",),
            vmem_limit_bytes=vmem_limit),
    )(gi, whh_t, bhh)
    return hn.reshape(n_features, hidden)


def init_params(key, rnn_type, n_features, hidden):
    """PyTorch-style init: U(-1/sqrt(hidden), 1/sqrt(hidden)) for all params."""
    G = _num_gates(rnn_type)
    k = 1.0 / jnp.sqrt(jnp.float32(hidden))
    k1, k2, k3, k4 = jax.random.split(key, 4)
    # PyTorch stores weight_ih as (G*H, n_features), weight_hh as (G*H, H);
    # we keep them transposed for row-vector @ matrix products in the kernel.
    wih_t = jax.random.uniform(k1, (n_features, G * hidden), jnp.float32, -k, k)
    whh_t = jax.random.uniform(k2, (hidden, G * hidden), jnp.float32, -k, k)
    bih = jax.random.uniform(k3, (1, G * hidden), jnp.float32, -k, k)
    bhh = jax.random.uniform(k4, (1, G * hidden), jnp.float32, -k, k)
    return wih_t, whh_t, bih, bhh


def ref_encoder(x, wih_t, whh_t, bih, bhh, rnn_type, seq_len, n_features,
                hidden):
    """Pure-JAX reference of the PyTorch forward (for validation)."""
    H = hidden
    x2 = x.reshape(seq_len, n_features).astype(jnp.float32)
    h = jnp.zeros((1, H), jnp.float32)
    c = jnp.zeros((1, H), jnp.float32)
    for t in range(seq_len):
        gi = x2[t:t + 1] @ wih_t + bih
        gh = h @ whh_t + bhh
        if rnn_type == "LSTM":
            g = gi + gh
            i_g = jax.nn.sigmoid(g[:, 0:H])
            f_g = jax.nn.sigmoid(g[:, H:2 * H])
            g_g = jnp.tanh(g[:, 2 * H:3 * H])
            o_g = jax.nn.sigmoid(g[:, 3 * H:4 * H])
            c = f_g * c + i_g * g_g
            h = o_g * jnp.tanh(c)
        elif rnn_type == "GRU":
            r_g = jax.nn.sigmoid(gi[:, 0:H] + gh[:, 0:H])
            z_g = jax.nn.sigmoid(gi[:, H:2 * H] + gh[:, H:2 * H])
            # note: PyTorch applies r to (W_hn h + b_hn)
            n_g = jnp.tanh(gi[:, 2 * H:3 * H] + r_g * gh[:, 2 * H:3 * H])
            h = (1.0 - z_g) * n_g + z_g * h
        else:
            h = jnp.tanh(gi + gh)
    return h.reshape(n_features, H)


if __name__ == "__main__":
    root = jax.random.PRNGKey(0)
    n_features, embedding_dim = 1, 32

    # ---- small register-resident path: seq_len=16 --------------------------
    seq_len = 16
    kx, kp = jax.random.split(root)
    x = jax.random.normal(kx, (seq_len, n_features), jnp.float32)
    for i, rnn_type in enumerate(("LSTM", "GRU", "RNN")):
        kparams = jax.random.fold_in(kp, i)
        wih_t, whh_t, bih, bhh = init_params(kparams, rnn_type, n_features,
                                             embedding_dim)
        out = encoder_forward(x, wih_t, whh_t, bih, bhh, rnn_type=rnn_type,
                              seq_len=seq_len, n_features=n_features,
                              hidden=embedding_dim)
        out = jax.block_until_ready(out)
        ref = ref_encoder(x, wih_t, whh_t, bih, bhh, rnn_type, seq_len,
                          n_features, embedding_dim)
        assert out.shape == (n_features, embedding_dim)
        assert jnp.allclose(out, ref, atol=2e-5, rtol=2e-5), \
            f"small-path mismatch vs reference for {rnn_type}"

    # ---- streaming/chunked path (forced via chunk=): seq_len=64, chunk=16 --
    seq_len2 = 64
    kx2, kp2 = jax.random.split(jax.random.fold_in(root, 1))
    xl = jax.random.normal(kx2, (seq_len2, n_features), jnp.float32)
    for i, rnn_type in enumerate(("LSTM", "GRU", "RNN")):
        kparams = jax.random.fold_in(kp2, i)
        wih_t, whh_t, bih, bhh = init_params(kparams, rnn_type, n_features,
                                             embedding_dim)
        out = encoder_forward(xl, wih_t, whh_t, bih, bhh, rnn_type=rnn_type,
                              seq_len=seq_len2, n_features=n_features,
                              hidden=embedding_dim, chunk=16)
        out = jax.block_until_ready(out)
        ref = ref_encoder(xl, wih_t, whh_t, bih, bhh, rnn_type, seq_len2,
                          n_features, embedding_dim)
        assert out.shape == (n_features, embedding_dim)
        assert jnp.allclose(out, ref, atol=1e-4, rtol=1e-4), \
            f"chunked-path mismatch vs reference for {rnn_type}"

    print("KERNEL_OK")
</pallas_src>

<mosaic_0001>
module attributes {stable_mosaic.version = 11 : i64} {
  func.func @kernel(%arg0: memref<16x1xf32, #tpu.memory_space<vmem>>, %arg1: memref<1x128xf32, #tpu.memory_space<vmem>>, %arg2: memref<32x128xf32, #tpu.memory_space<vmem>>, %arg3: memref<1x128xf32, #tpu.memory_space<vmem>>, %arg4: memref<1x128xf32, #tpu.memory_space<vmem>>, %arg5: memref<1x32xf32, #tpu.memory_space<vmem>>) attributes {dimension_semantics = [], scalar_prefetch = 0 : i64, scratch_operands = 0 : i64, tpu.core_type = #tpu.core_type<tc>} {
    %c0 = arith.constant 0 : index
    %c0_0 = arith.constant 0 : index
    %0 = vector.load %arg3[%c0, %c0_0] : memref<1x128xf32, #tpu.memory_space<vmem>>, vector<1x128xf32>
    %c0_1 = arith.constant 0 : index
    %c0_2 = arith.constant 0 : index
    %1 = vector.load %arg4[%c0_1, %c0_2] : memref<1x128xf32, #tpu.memory_space<vmem>>, vector<1x128xf32>
    %2 = arith.addf %0, %1 : vector<1x128xf32>
    %c0_3 = arith.constant 0 : index
    %c0_4 = arith.constant 0 : index
    %3 = vector.load %arg0[%c0_3, %c0_4] : memref<16x1xf32, #tpu.memory_space<vmem>>, vector<16x1xf32>
    %c0_5 = arith.constant 0 : index
    %c0_6 = arith.constant 0 : index
    %4 = vector.load %arg1[%c0_5, %c0_6] : memref<1x128xf32, #tpu.memory_space<vmem>>, vector<1x128xf32>
    %5 = vector.broadcast %3 : vector<16x1xf32> to vector<16x128xf32>
    %6 = vector.broadcast %4 : vector<1x128xf32> to vector<16x128xf32>
    %7 = arith.mulf %5, %6 : vector<16x128xf32>
    %8 = vector.broadcast %2 : vector<1x128xf32> to vector<16x128xf32>
    %9 = arith.addf %7, %8 : vector<16x128xf32>
    %c0_7 = arith.constant 0 : index
    %c0_8 = arith.constant 0 : index
    %10 = vector.load %arg2[%c0_7, %c0_8] : memref<32x128xf32, #tpu.memory_space<vmem>>, vector<32x128xf32>
    %cst = arith.constant 0.000000e+00 : f32
    %11 = vector.broadcast %cst : f32 to vector<1x32xf32>
    %cst_9 = arith.constant 0.000000e+00 : f32
    %12 = vector.broadcast %cst_9 : f32 to vector<1x32xf32>
    %cst_10 = arith.constant dense<0.000000e+00> : vector<1x128xf32>
    %13 = tpu.matmul %11, %10, %cst_10 {dimension_numbers = #tpu.dot_dimension_numbers<[1], [0], [0], [1], [0, 0, 1, 1], [], []>} : vector<1x32xf32>, vector<32x128xf32>, vector<1x128xf32> -> vector<1x128xf32>
    %14 = vector.extract_strided_slice %9 {offsets = [0, 0], sizes = [1, 128], strides = [1, 1]} : vector<16x128xf32> to vector<1x128xf32>
    %15 = arith.addf %14, %13 : vector<1x128xf32>
    %16 = arith.negf %15 : vector<1x128xf32>
    %17 = math.exp %16 : vector<1x128xf32>
    %cst_11 = arith.constant 1.000000e+00 : f32
    %18 = vector.broadcast %cst_11 : f32 to vector<1x128xf32>
    %19 = arith.addf %18, %17 : vector<1x128xf32>
    %20 = arith.divf %18, %19 : vector<1x128xf32>
    %21 = math.tanh %15 : vector<1x128xf32>
    %22 = vector.extract_strided_slice %20 {offsets = [0, 32], sizes = [1, 32], strides = [1, 1]} : vector<1x128xf32> to vector<1x32xf32>
    %23 = arith.mulf %22, %12 : vector<1x32xf32>
    %24 = vector.extract_strided_slice %20 {offsets = [0, 0], sizes = [1, 32], strides = [1, 1]} : vector<1x128xf32> to vector<1x32xf32>
    %25 = vector.extract_strided_slice %21 {offsets = [0, 64], sizes = [1, 32], strides = [1, 1]} : vector<1x128xf32> to vector<1x32xf32>
    %26 = arith.mulf %24, %25 : vector<1x32xf32>
    %27 = arith.addf %23, %26 : vector<1x32xf32>
    %28 = vector.extract_strided_slice %20 {offsets = [0, 96], sizes = [1, 32], strides = [1, 1]} : vector<1x128xf32> to vector<1x32xf32>
    %29 = math.tanh %27 : vector<1x32xf32>
    %30 = arith.mulf %28, %29 : vector<1x32xf32>
    %cst_12 = arith.constant dense<0.000000e+00> : vector<1x128xf32>
    %31 = tpu.matmul %30, %10, %cst_12 {dimension_numbers = #tpu.dot_dimension_numbers<[1], [0], [0], [1], [0, 0, 1, 1], [], []>} : vector<1x32xf32>, vector<32x128xf32>, vector<1x128xf32> -> vector<1x128xf32>
    %32 = vector.extract_strided_slice %9 {offsets = [1, 0], sizes = [1, 128], strides = [1, 1]} : vector<16x128xf32> to vector<1x128xf32>
    %33 = arith.addf %32, %31 : vector<1x128xf32>
    %34 = arith.negf %33 : vector<1x128xf32>
    %35 = math.exp %34 : vector<1x128xf32>
    %cst_13 = arith.constant 1.000000e+00 : f32
    %36 = vector.broadcast %cst_13 : f32 to vector<1x128xf32>
    %37 = arith.addf %36, %35 : vector<1x128xf32>
    %38 = arith.divf %36, %37 : vector<1x128xf32>
    %39 = math.tanh %33 : vector<1x128xf32>
    %40 = vector.extract_strided_slice %38 {offsets = [0, 32], sizes = [1, 32], strides = [1, 1]} : vector<1x128xf32> to vector<1x32xf32>
    %41 = arith.mulf %40, %27 : vector<1x32xf32>
    %42 = vector.extract_strided_slice %38 {offsets = [0, 0], sizes = [1, 32], strides = [1, 1]} : vector<1x128xf32> to vector<1x32xf32>
    %43 = vector.extract_strided_slice %39 {offsets = [0, 64], sizes = [1, 32], strides = [1, 1]} : vector<1x128xf32> to vector<1x32xf32>
    %44 = arith.mulf %42, %43 : vector<1x32xf32>
    %45 = arith.addf %41, %44 : vector<1x32xf32>
    %46 = vector.extract_strided_slice %38 {offsets = [0, 96], sizes = [1, 32], strides = [1, 1]} : vector<1x128xf32> to vector<1x32xf32>
    %47 = math.tanh %45 : vector<1x32xf32>
    %48 = arith.mulf %46, %47 : vector<1x32xf32>
    %cst_14 = arith.constant dense<0.000000e+00> : vector<1x128xf32>
    %49 = tpu.matmul %48, %10, %cst_14 {dimension_numbers = #tpu.dot_dimension_numbers<[1], [0], [0], [1], [0, 0, 1, 1], [], []>} : vector<1x32xf32>, vector<32x128xf32>, vector<1x128xf32> -> vector<1x128xf32>
    %50 = vector.extract_strided_slice %9 {offsets = [2, 0], sizes = [1, 128], strides = [1, 1]} : vector<16x128xf32> to vector<1x128xf32>
    %51 = arith.addf %50, %49 : vector<1x128xf32>
    %52 = arith.negf %51 : vector<1x128xf32>
    %53 = math.exp %52 : vector<1x128xf32>
    %cst_15 = arith.constant 1.000000e+00 : f32
    %54 = vector.broadcast %cst_15 : f32 to vector<1x128xf32>
    %55 = arith.addf %54, %53 : vector<1x128xf32>
    %56 = arith.divf %54, %55 : vector<1x128xf32>
    %57 = math.tanh %51 : vector<1x128xf32>
    %58 = vector.extract_strided_slice %56 {offsets = [0, 32], sizes = [1, 32], strides = [1, 1]} : vector<1x128xf32> to vector<1x32xf32>
    %59 = arith.mulf %58, %45 : vector<1x32xf32>
    %60 = vector.extract_strided_slice %56 {offsets = [0, 0], sizes = [1, 32], strides = [1, 1]} : vector<1x128xf32> to vector<1x32xf32>
    %61 = vector.extract_strided_slice %57 {offsets = [0, 64], sizes = [1, 32], strides = [1, 1]} : vector<1x128xf32> to vector<1x32xf32>
    %62 = arith.mulf %60, %61 : vector<1x32xf32>
    %63 = arith.addf %59, %62 : vector<1x32xf32>
    %64 = vector.extract_strided_slice %56 {offsets = [0, 96], sizes = [1, 32], strides = [1, 1]} : vector<1x128xf32> to vector<1x32xf32>
    %65 = math.tanh %63 : vector<1x32xf32>
    %66 = arith.mulf %64, %65 : vector<1x32xf32>
    %cst_16 = arith.constant dense<0.000000e+00> : vector<1x128xf32>
    %67 = tpu.matmul %66, %10, %cst_16 {dimension_numbers = #tpu.dot_dimension_numbers<[1], [0], [0], [1], [0, 0, 1, 1], [], []>} : vector<1x32xf32>, vector<32x128xf32>, vector<1x128xf32> -> vector<1x128xf32>
    %68 = vector.extract_strided_slice %9 {offsets = [3, 0], sizes = [1, 128], strides = [1, 1]} : vector<16x128xf32> to vector<1x128xf32>
    %69 = arith.addf %68, %67 : vector<1x128xf32>
    %70 = arith.negf %69 : vector<1x128xf32>
    %71 = math.exp %70 : vector<1x128xf32>
    %cst_17 = arith.constant 1.000000e+00 : f32
    %72 = vector.broadcast %cst_17 : f32 to vector<1x128xf32>
    %73 = arith.addf %72, %71 : vector<1x128xf32>
    %74 = arith.divf %72, %73 : vector<1x128xf32>
    %75 = math.tanh %69 : vector<1x128xf32>
    %76 = vector.extract_strided_slice %74 {offsets = [0, 32], sizes = [1, 32], strides = [1, 1]} : vector<1x128xf32> to vector<1x32xf32>
    %77 = arith.mulf %76, %63 : vector<1x32xf32>
    %78 = vector.extract_strided_slice %74 {offsets = [0, 0], sizes = [1, 32], strides = [1, 1]} : vector<1x128xf32> to vector<1x32xf32>
    %79 = vector.extract_strided_slice %75 {offsets = [0, 64], sizes = [1, 32], strides = [1, 1]} : vector<1x128xf32> to vector<1x32xf32>
    %80 = arith.mulf %78, %79 : vector<1x32xf32>
    %81 = arith.addf %77, %80 : vector<1x32xf32>
    %82 = vector.extract_strided_slice %74 {offsets = [0, 96], sizes = [1, 32], strides = [1, 1]} : vector<1x128xf32> to vector<1x32xf32>
    %83 = math.tanh %81 : vector<1x32xf32>
    %84 = arith.mulf %82, %83 : vector<1x32xf32>
    %cst_18 = arith.constant dense<0.000000e+00> : vector<1x128xf32>
    %85 = tpu.matmul %84, %10, %cst_18 {dimension_numbers = #tpu.dot_dimension_numbers<[1], [0], [0], [1], [0, 0, 1, 1], [], []>} : vector<1x32xf32>, vector<32x128xf32>, vector<1x128xf32> -> vector<1x128xf32>
    %86 = vector.extract_strided_slice %9 {offsets = [4, 0], sizes = [1, 128], strides = [1, 1]} : vector<16x128xf32> to vector<1x128xf32>
    %87 = arith.addf %86, %85 : vector<1x128xf32>
    %88 = arith.negf %87 : vector<1x128xf32>
    %89 = math.exp %88 : vector<1x128xf32>
    %cst_19 = arith.constant 1.000000e+00 : f32
    %90 = vector.broadcast %cst_19 : f32 to vector<1x128xf32>
    %91 = arith.addf %90, %89 : vector<1x128xf32>
    %92 = arith.divf %90, %91 : vector<1x128xf32>
    %93 = math.tanh %87 : vector<1x128xf32>
    %94 = vector.extract_strided_slice %92 {offsets = [0, 32], sizes = [1, 32], strides = [1, 1]} : vector<1x128xf32> to vector<1x32xf32>
    %95 = arith.mulf %94, %81 : vector<1x32xf32>
    %96 = vector.extract_strided_slice %92 {offsets = [0, 0], sizes = [1, 32], strides = [1, 1]} : vector<1x128xf32> to vector<1x32xf32>
    %97 = vector.extract_strided_slice %93 {offsets = [0, 64], sizes = [1, 32], strides = [1, 1]} : vector<1x128xf32> to vector<1x32xf32>
    %98 = arith.mulf %96, %97 : vector<1x32xf32>
    %99 = arith.addf %95, %98 : vector<1x32xf32>
    %100 = vector.extract_strided_slice %92 {offsets = [0, 96], sizes = [1, 32], strides = [1, 1]} : vector<1x128xf32> to vector<1x32xf32>
    %101 = math.tanh %99 : vector<1x32xf32>
    %102 = arith.mulf %100, %101 : vector<1x32xf32>
    %cst_20 = arith.constant dense<0.000000e+00> : vector<1x128xf32>
    %103 = tpu.matmul %102, %10, %cst_20 {dimension_numbers = #tpu.dot_dimension_numbers<[1], [0], [0], [1], [0, 0, 1, 1], [], []>} : vector<1x32xf32>, vector<32x128xf32>, vector<1x128xf32> -> vector<1x128xf32>
    %104 = vector.extract_strided_slice %9 {offsets = [5, 0], sizes = [1, 128], strides = [1, 1]} : vector<16x128xf32> to vector<1x128xf32>
    %105 = arith.addf %104, %103 : vector<1x128xf32>
    %106 = arith.negf %105 : vector<1x128xf32>
    %107 = math.exp %106 : vector<1x128xf32>
    %cst_21 = arith.constant 1.000000e+00 : f32
    %108 = vector.broadcast %cst_21 : f32 to vector<1x128xf32>
    %109 = arith.addf %108, %107 : vector<1x128xf32>
    %110 = arith.divf %108, %109 : vector<1x128xf32>
    %111 = math.tanh %105 : vector<1x128xf32>
    %112 = vector.extract_strided_slice %110 {offsets = [0, 32], sizes = [1, 32], strides = [1, 1]} : vector<1x128xf32> to vector<1x32xf32>
    %113 = arith.mulf %112, %99 : vector<1x32xf32>
    %114 = vector.extract_strided_slice %110 {offsets = [0, 0], sizes = [1, 32], strides = [1, 1]} : vector<1x128xf32> to vector<1x32xf32>
    %115 = vector.extract_strided_slice %111 {offsets = [0, 64], sizes = [1, 32], strides = [1, 1]} : vector<1x128xf32> to vector<1x32xf32>
    %116 = arith.mulf %114, %115 : vector<1x32xf32>
    %117 = arith.addf %113, %116 : vector<1x32xf32>
    %118 = vector.extract_strided_slice %110 {offsets = [0, 96], sizes = [1, 32], strides = [1, 1]} : vector<1x128xf32> to vector<1x32xf32>
    %119 = math.tanh %117 : vector<1x32xf32>
    %120 = arith.mulf %118, %119 : vector<1x32xf32>
    %cst_22 = arith.constant dense<0.000000e+00> : vector<1x128xf32>
    %121 = tpu.matmul %120, %10, %cst_22 {dimension_numbers = #tpu.dot_dimension_numbers<[1], [0], [0], [1], [0, 0, 1, 1], [], []>} : vector<1x32xf32>, vector<32x128xf32>, vector<1x128xf32> -> vector<1x128xf32>
    %122 = vector.extract_strided_slice %9 {offsets = [6, 0], sizes = [1, 128], strides = [1, 1]} : vector<16x128xf32> to vector<1x128xf32>
    %123 = arith.addf %122, %121 : vector<1x128xf32>
    %124 = arith.negf %123 : vector<1x128xf32>
    %125 = math.exp %124 : vector<1x128xf32>
    %cst_23 = arith.constant 1.000000e+00 : f32
    %126 = vector.broadcast %cst_23 : f32 to vector<1x128xf32>
    %127 = arith.addf %126, %125 : vector<1x128xf32>
    %128 = arith.divf %126, %127 : vector<1x128xf32>
    %129 = math.tanh %123 : vector<1x128xf32>
    %130 = vector.extract_strided_slice %128 {offsets = [0, 32], sizes = [1, 32], strides = [1, 1]} : vector<1x128xf32> to vector<1x32xf32>
    %131 = arith.mulf %130, %117 : vector<1x32xf32>
    %132 = vector.extract_strided_slice %128 {offsets = [0, 0], sizes = [1, 32], strides = [1, 1]} : vector<1x128xf32> to vector<1x32xf32>
    %133 = vector.extract_strided_slice %129 {offsets = [0, 64], sizes = [1, 32], strides = [1, 1]} : vector<1x128xf32> to vector<1x32xf32>
    %134 = arith.mulf %132, %133 : vector<1x32xf32>
    %135 = arith.addf %131, %134 : vector<1x32xf32>
    %136 = vector.extract_strided_slice %128 {offsets = [0, 96], sizes = [1, 32], strides = [1, 1]} : vector<1x128xf32> to vector<1x32xf32>
    %137 = math.tanh %135 : vector<1x32xf32>
    %138 = arith.mulf %136, %137 : vector<1x32xf32>
    %cst_24 = arith.constant dense<0.000000e+00> : vector<1x128xf32>
    %139 = tpu.matmul %138, %10, %cst_24 {dimension_numbers = #tpu.dot_dimension_numbers<[1], [0], [0], [1], [0, 0, 1, 1], [], []>} : vector<1x32xf32>, vector<32x128xf32>, vector<1x128xf32> -> vector<1x128xf32>
    %140 = vector.extract_strided_slice %9 {offsets = [7, 0], sizes = [1, 128], strides = [1, 1]} : vector<16x128xf32> to vector<1x128xf32>
    %141 = arith.addf %140, %139 : vector<1x128xf32>
    %142 = arith.negf %141 : vector<1x128xf32>
    %143 = math.exp %142 : vector<1x128xf32>
    %cst_25 = arith.constant 1.000000e+00 : f32
    %144 = vector.broadcast %cst_25 : f32 to vector<1x128xf32>
    %145 = arith.addf %144, %143 : vector<1x128xf32>
    %146 = arith.divf %144, %145 : vector<1x128xf32>
    %147 = math.tanh %141 : vector<1x128xf32>
    %148 = vector.extract_strided_slice %146 {offsets = [0, 32], sizes = [1, 32], strides = [1, 1]} : vector<1x128xf32> to vector<1x32xf32>
    %149 = arith.mulf %148, %135 : vector<1x32xf32>
    %150 = vector.extract_strided_slice %146 {offsets = [0, 0], sizes = [1, 32], strides = [1, 1]} : vector<1x128xf32> to vector<1x32xf32>
    %151 = vector.extract_strided_slice %147 {offsets = [0, 64], sizes = [1, 32], strides = [1, 1]} : vector<1x128xf32> to vector<1x32xf32>
    %152 = arith.mulf %150, %151 : vector<1x32xf32>
    %153 = arith.addf %149, %152 : vector<1x32xf32>
    %154 = vector.extract_strided_slice %146 {offsets = [0, 96], sizes = [1, 32], strides = [1, 1]} : vector<1x128xf32> to vector<1x32xf32>
    %155 = math.tanh %153 : vector<1x32xf32>
    %156 = arith.mulf %154, %155 : vector<1x32xf32>
    %cst_26 = arith.constant dense<0.000000e+00> : vector<1x128xf32>
    %157 = tpu.matmul %156, %10, %cst_26 {dimension_numbers = #tpu.dot_dimension_numbers<[1], [0], [0], [1], [0, 0, 1, 1], [], []>} : vector<1x32xf32>, vector<32x128xf32>, vector<1x128xf32> -> vector<1x128xf32>
    %158 = vector.extract_strided_slice %9 {offsets = [8, 0], sizes = [1, 128], strides = [1, 1]} : vector<16x128xf32> to vector<1x128xf32>
    %159 = arith.addf %158, %157 : vector<1x128xf32>
    %160 = arith.negf %159 : vector<1x128xf32>
    %161 = math.exp %160 : vector<1x128xf32>
    %cst_27 = arith.constant 1.000000e+00 : f32
    %162 = vector.broadcast %cst_27 : f32 to vector<1x128xf32>
    %163 = arith.addf %162, %161 : vector<1x128xf32>
    %164 = arith.divf %162, %163 : vector<1x128xf32>
    %165 = math.tanh %159 : vector<1x128xf32>
    %166 = vector.extract_strided_slice %164 {offsets = [0, 32], sizes = [1, 32], strides = [1, 1]} : vector<1x128xf32> to vector<1x32xf32>
    %167 = arith.mulf %166, %153 : vector<1x32xf32>
    %168 = vector.extract_strided_slice %164 {offsets = [0, 0], sizes = [1, 32], strides = [1, 1]} : vector<1x128xf32> to vector<1x32xf32>
    %169 = vector.extract_strided_slice %165 {offsets = [0, 64], sizes = [1, 32], strides = [1, 1]} : vector<1x128xf32> to vector<1x32xf32>
    %170 = arith.mulf %168, %169 : vector<1x32xf32>
    %171 = arith.addf %167, %170 : vector<1x32xf32>
    %172 = vector.extract_strided_slice %164 {offsets = [0, 96], sizes = [1, 32], strides = [1, 1]} : vector<1x128xf32> to vector<1x32xf32>
    %173 = math.tanh %171 : vector<1x32xf32>
    %174 = arith.mulf %172, %173 : vector<1x32xf32>
    %cst_28 = arith.constant dense<0.000000e+00> : vector<1x128xf32>
    %175 = tpu.matmul %174, %10, %cst_28 {dimension_numbers = #tpu.dot_dimension_numbers<[1], [0], [0], [1], [0, 0, 1, 1], [], []>} : vector<1x32xf32>, vector<32x128xf32>, vector<1x128xf32> -> vector<1x128xf32>
    %176 = vector.extract_strided_slice %9 {offsets = [9, 0], sizes = [1, 128], strides = [1, 1]} : vector<16x128xf32> to vector<1x128xf32>
    %177 = arith.addf %176, %175 : vector<1x128xf32>
    %178 = arith.negf %177 : vector<1x128xf32>
    %179 = math.exp %178 : vector<1x128xf32>
    %cst_29 = arith.constant 1.000000e+00 : f32
    %180 = vector.broadcast %cst_29 : f32 to vector<1x128xf32>
    %181 = arith.addf %180, %179 : vector<1x128xf32>
    %182 = arith.divf %180, %181 : vector<1x128xf32>
    %183 = math.tanh %177 : vector<1x128xf32>
    %184 = vector.extract_strided_slice %182 {offsets = [0, 32], sizes = [1, 32], strides = [1, 1]} : vector<1x128xf32> to vector<1x32xf32>
    %185 = arith.mulf %184, %171 : vector<1x32xf32>
    %186 = vector.extract_strided_slice %182 {offsets = [0, 0], sizes = [1, 32], strides = [1, 1]} : vector<1x128xf32> to vector<1x32xf32>
    %187 = vector.extract_strided_slice %183 {offsets = [0, 64], sizes = [1, 32], strides = [1, 1]} : vector<1x128xf32> to vector<1x32xf32>
    %188 = arith.mulf %186, %187 : vector<1x32xf32>
    %189 = arith.addf %185, %188 : vector<1x32xf32>
    %190 = vector.extract_strided_slice %182 {offsets = [0, 96], sizes = [1, 32], strides = [1, 1]} : vector<1x128xf32> to vector<1x32xf32>
    %191 = math.tanh %189 : vector<1x32xf32>
    %192 = arith.mulf %190, %191 : vector<1x32xf32>
    %cst_30 = arith.constant dense<0.000000e+00> : vector<1x128xf32>
    %193 = tpu.matmul %192, %10, %cst_30 {dimension_numbers = #tpu.dot_dimension_numbers<[1], [0], [0], [1], [0, 0, 1, 1], [], []>} : vector<1x32xf32>, vector<32x128xf32>, vector<1x128xf32> -> vector<1x128xf32>
    %194 = vector.extract_strided_slice %9 {offsets = [10, 0], sizes = [1, 128], strides = [1, 1]} : vector<16x128xf32> to vector<1x128xf32>
    %195 = arith.addf %194, %193 : vector<1x128xf32>
    %196 = arith.negf %195 : vector<1x128xf32>
    %197 = math.exp %196 : vector<1x128xf32>
    %cst_31 = arith.constant 1.000000e+00 : f32
    %198 = vector.broadcast %cst_31 : f32 to vector<1x128xf32>
    %199 = arith.addf %198, %197 : vector<1x128xf32>
    %200 = arith.divf %198, %199 : vector<1x128xf32>
    %201 = math.tanh %195 : vector<1x128xf32>
    %202 = vector.extract_strided_slice %200 {offsets = [0, 32], sizes = [1, 32], strides = [1, 1]} : vector<1x128xf32> to vector<1x32xf32>
    %203 = arith.mulf %202, %189 : vector<1x32xf32>
    %204 = vector.extract_strided_slice %200 {offsets = [0, 0], sizes = [1, 32], strides = [1, 1]} : vector<1x128xf32> to vector<1x32xf32>
    %205 = vector.extract_strided_slice %201 {offsets = [0, 64], sizes = [1, 32], strides = [1, 1]} : vector<1x128xf32> to vector<1x32xf32>
    %206 = arith.mulf %204, %205 : vector<1x32xf32>
    %207 = arith.addf %203, %206 : vector<1x32xf32>
    %208 = vector.extract_strided_slice %200 {offsets = [0, 96], sizes = [1, 32], strides = [1, 1]} : vector<1x128xf32> to vector<1x32xf32>
    %209 = math.tanh %207 : vector<1x32xf32>
    %210 = arith.mulf %208, %209 : vector<1x32xf32>
    %cst_32 = arith.constant dense<0.000000e+00> : vector<1x128xf32>
    %211 = tpu.matmul %210, %10, %cst_32 {dimension_numbers = #tpu.dot_dimension_numbers<[1], [0], [0], [1], [0, 0, 1, 1], [], []>} : vector<1x32xf32>, vector<32x128xf32>, vector<1x128xf32> -> vector<1x128xf32>
    %212 = vector.extract_strided_slice %9 {offsets = [11, 0], sizes = [1, 128], strides = [1, 1]} : vector<16x128xf32> to vector<1x128xf32>
    %213 = arith.addf %212, %211 : vector<1x128xf32>
    %214 = arith.negf %213 : vector<1x128xf32>
    %215 = math.exp %214 : vector<1x128xf32>
    %cst_33 = arith.constant 1.000000e+00 : f32
    %216 = vector.broadcast %cst_33 : f32 to vector<1x128xf32>
    %217 = arith.addf %216, %215 : vector<1x128xf32>
    %218 = arith.divf %216, %217 : vector<1x128xf32>
    %219 = math.tanh %213 : vector<1x128xf32>
    %220 = vector.extract_strided_slice %218 {offsets = [0, 32], sizes = [1, 32], strides = [1, 1]} : vector<1x128xf32> to vector<1x32xf32>
    %221 = arith.mulf %220, %207 : vector<1x32xf32>
    %222 = vector.extract_strided_slice %218 {offsets = [0, 0], sizes = [1, 32], strides = [1, 1]} : vector<1x128xf32> to vector<1x32xf32>
    %223 = vector.extract_strided_slice %219 {offsets = [0, 64], sizes = [1, 32], strides = [1, 1]} : vector<1x128xf32> to vector<1x32xf32>
    %224 = arith.mulf %222, %223 : vector<1x32xf32>
    %225 = arith.addf %221, %224 : vector<1x32xf32>
    %226 = vector.extract_strided_slice %218 {offsets = [0, 96], sizes = [1, 32], strides = [1, 1]} : vector<1x128xf32> to vector<1x32xf32>
    %227 = math.tanh %225 : vector<1x32xf32>
    %228 = arith.mulf %226, %227 : vector<1x32xf32>
    %cst_34 = arith.constant dense<0.000000e+00> : vector<1x128xf32>
    %229 = tpu.matmul %228, %10, %cst_34 {dimension_numbers = #tpu.dot_dimension_numbers<[1], [0], [0], [1], [0, 0, 1, 1], [], []>} : vector<1x32xf32>, vector<32x128xf32>, vector<1x128xf32> -> vector<1x128xf32>
    %230 = vector.extract_strided_slice %9 {offsets = [12, 0], sizes = [1, 128], strides = [1, 1]} : vector<16x128xf32> to vector<1x128xf32>
    %231 = arith.addf %230, %229 : vector<1x128xf32>
    %232 = arith.negf %231 : vector<1x128xf32>
    %233 = math.exp %232 : vector<1x128xf32>
    %cst_35 = arith.constant 1.000000e+00 : f32
    %234 = vector.broadcast %cst_35 : f32 to vector<1x128xf32>
    %235 = arith.addf %234, %233 : vector<1x128xf32>
    %236 = arith.divf %234, %235 : vector<1x128xf32>
    %237 = math.tanh %231 : vector<1x128xf32>
    %238 = vector.extract_strided_slice %236 {offsets = [0, 32], sizes = [1, 32], strides = [1, 1]} : vector<1x128xf32> to vector<1x32xf32>
    %239 = arith.mulf %238, %225 : vector<1x32xf32>
    %240 = vector.extract_strided_slice %236 {offsets = [0, 0], sizes = [1, 32], strides = [1, 1]} : vector<1x128xf32> to vector<1x32xf32>
    %241 = vector.extract_strided_slice %237 {offsets = [0, 64], sizes = [1, 32], strides = [1, 1]} : vector<1x128xf32> to vector<1x32xf32>
    %242 = arith.mulf %240, %241 : vector<1x32xf32>
    %243 = arith.addf %239, %242 : vector<1x32xf32>
    %244 = vector.extract_strided_slice %236 {offsets = [0, 96], sizes = [1, 32], strides = [1, 1]} : vector<1x128xf32> to vector<1x32xf32>
    %245 = math.tanh %243 : vector<1x32xf32>
    %246 = arith.mulf %244, %245 : vector<1x32xf32>
    %cst_36 = arith.constant dense<0.000000e+00> : vector<1x128xf32>
    %247 = tpu.matmul %246, %10, %cst_36 {dimension_numbers = #tpu.dot_dimension_numbers<[1], [0], [0], [1], [0, 0, 1, 1], [], []>} : vector<1x32xf32>, vector<32x128xf32>, vector<1x128xf32> -> vector<1x128xf32>
    %248 = vector.extract_strided_slice %9 {offsets = [13, 0], sizes = [1, 128], strides = [1, 1]} : vector<16x128xf32> to vector<1x128xf32>
    %249 = arith.addf %248, %247 : vector<1x128xf32>
    %250 = arith.negf %249 : vector<1x128xf32>
    %251 = math.exp %250 : vector<1x128xf32>
    %cst_37 = arith.constant 1.000000e+00 : f32
    %252 = vector.broadcast %cst_37 : f32 to vector<1x128xf32>
    %253 = arith.addf %252, %251 : vector<1x128xf32>
    %254 = arith.divf %252, %253 : vector<1x128xf32>
    %255 = math.tanh %249 : vector<1x128xf32>
    %256 = vector.extract_strided_slice %254 {offsets = [0, 32], sizes = [1, 32], strides = [1, 1]} : vector<1x128xf32> to vector<1x32xf32>
    %257 = arith.mulf %256, %243 : vector<1x32xf32>
    %258 = vector.extract_strided_slice %254 {offsets = [0, 0], sizes = [1, 32], strides = [1, 1]} : vector<1x128xf32> to vector<1x32xf32>
    %259 = vector.extract_strided_slice %255 {offsets = [0, 64], sizes = [1, 32], strides = [1, 1]} : vector<1x128xf32> to vector<1x32xf32>
    %260 = arith.mulf %258, %259 : vector<1x32xf32>
    %261 = arith.addf %257, %260 : vector<1x32xf32>
    %262 = vector.extract_strided_slice %254 {offsets = [0, 96], sizes = [1, 32], strides = [1, 1]} : vector<1x128xf32> to vector<1x32xf32>
    %263 = math.tanh %261 : vector<1x32xf32>
    %264 = arith.mulf %262, %263 : vector<1x32xf32>
    %cst_38 = arith.constant dense<0.000000e+00> : vector<1x128xf32>
    %265 = tpu.matmul %264, %10, %cst_38 {dimension_numbers = #tpu.dot_dimension_numbers<[1], [0], [0], [1], [0, 0, 1, 1], [], []>} : vector<1x32xf32>, vector<32x128xf32>, vector<1x128xf32> -> vector<1x128xf32>
    %266 = vector.extract_strided_slice %9 {offsets = [14, 0], sizes = [1, 128], strides = [1, 1]} : vector<16x128xf32> to vector<1x128xf32>
    %267 = arith.addf %266, %265 : vector<1x128xf32>
    %268 = arith.negf %267 : vector<1x128xf32>
    %269 = math.exp %268 : vector<1x128xf32>
    %cst_39 = arith.constant 1.000000e+00 : f32
    %270 = vector.broadcast %cst_39 : f32 to vector<1x128xf32>
    %271 = arith.addf %270, %269 : vector<1x128xf32>
    %272 = arith.divf %270, %271 : vector<1x128xf32>
    %273 = math.tanh %267 : vector<1x128xf32>
    %274 = vector.extract_strided_slice %272 {offsets = [0, 32], sizes = [1, 32], strides = [1, 1]} : vector<1x128xf32> to vector<1x32xf32>
    %275 = arith.mulf %274, %261 : vector<1x32xf32>
    %276 = vector.extract_strided_slice %272 {offsets = [0, 0], sizes = [1, 32], strides = [1, 1]} : vector<1x128xf32> to vector<1x32xf32>
    %277 = vector.extract_strided_slice %273 {offsets = [0, 64], sizes = [1, 32], strides = [1, 1]} : vector<1x128xf32> to vector<1x32xf32>
    %278 = arith.mulf %276, %277 : vector<1x32xf32>
    %279 = arith.addf %275, %278 : vector<1x32xf32>
    %280 = vector.extract_strided_slice %272 {offsets = [0, 96], sizes = [1, 32], strides = [1, 1]} : vector<1x128xf32> to vector<1x32xf32>
    %281 = math.tanh %279 : vector<1x32xf32>
    %282 = arith.mulf %280, %281 : vector<1x32xf32>
    %cst_40 = arith.constant dense<0.000000e+00> : vector<1x128xf32>
    %283 = tpu.matmul %282, %10, %cst_40 {dimension_numbers = #tpu.dot_dimension_numbers<[1], [0], [0], [1], [0, 0, 1, 1], [], []>} : vector<1x32xf32>, vector<32x128xf32>, vector<1x128xf32> -> vector<1x128xf32>
    %284 = vector.extract_strided_slice %9 {offsets = [15, 0], sizes = [1, 128], strides = [1, 1]} : vector<16x128xf32> to vector<1x128xf32>
    %285 = arith.addf %284, %283 : vector<1x128xf32>
    %286 = arith.negf %285 : vector<1x128xf32>
    %287 = math.exp %286 : vector<1x128xf32>
    %cst_41 = arith.constant 1.000000e+00 : f32
    %288 = vector.broadcast %cst_41 : f32 to vector<1x128xf32>
    %289 = arith.addf %288, %287 : vector<1x128xf32>
    %290 = arith.divf %288, %289 : vector<1x128xf32>
    %291 = math.tanh %285 : vector<1x128xf32>
    %292 = vector.extract_strided_slice %290 {offsets = [0, 32], sizes = [1, 32], strides = [1, 1]} : vector<1x128xf32> to vector<1x32xf32>
    %293 = arith.mulf %292, %279 : vector<1x32xf32>
    %294 = vector.extract_strided_slice %290 {offsets = [0, 0], sizes = [1, 32], strides = [1, 1]} : vector<1x128xf32> to vector<1x32xf32>
    %295 = vector.extract_strided_slice %291 {offsets = [0, 64], sizes = [1, 32], strides = [1, 1]} : vector<1x128xf32> to vector<1x32xf32>
    %296 = arith.mulf %294, %295 : vector<1x32xf32>
    %297 = arith.addf %293, %296 : vector<1x32xf32>
    %298 = vector.extract_strided_slice %290 {offsets = [0, 96], sizes = [1, 32], strides = [1, 1]} : vector<1x128xf32> to vector<1x32xf32>
    %299 = math.tanh %297 : vector<1x32xf32>
    %300 = arith.mulf %298, %299 : vector<1x32xf32>
    %c0_42 = arith.constant 0 : index
    %c0_43 = arith.constant 0 : index
    %301 = vector.load %arg5[%c0_42, %c0_43] : memref<1x32xf32, #tpu.memory_space<vmem>>, vector<1x32xf32>
    tpu.vector_store %arg5[%c0_42, %c0_43], %300 {strides = array<i32>} : memref<1x32xf32, #tpu.memory_space<vmem>>, vector<1x32xf32>,
    return
  }
}

</mosaic_0001>

<bundles_post_ra>
// kernel: encoder_forward.1
= control target key start
LH: loop header
LB: loop body
LE: loop exit
PB: predicated region body
PF: predicated region fallthrough
CT: control target
= control target key end

     0   :  { %10 = vsyncpa [#allocation3], 0  ;;  %s2650_s0 = inlined_call_operand.vmem [shape: f32[16,1], index: 0, kind: input, shape index: {}]   ;;  %s2651_s1 = inlined_call_operand.vmem [shape: f32[1,128], index: 1, kind: input, shape index: {}]   ;;  %s2652_s2 = inlined_call_operand.hbm [shape: f32[32,128], index: 2, kind: input, shape index: {}]   ;;  %s2653_s3 = inlined_call_operand.vmem [shape: f32[1,128], index: 3, kind: input, shape index: {}]   ;;  %s2654_s4 = inlined_call_operand.vmem [shape: f32[1,128], index: 4, kind: input, shape index: {}]   ;;  %s2655_s5 = inlined_call_operand.hbm [shape: f32[1,32], index: 5, kind: output, shape index: {}]  }
   0x1   :  { %11 = vsyncpa [#allocation4], 0  ;;  %s2363_s18 = smov [#allocation2]   ;;  %s2315_s22 = scalar_lea.hbm %s2652_s2, 512 }
   0x2   :  { %s21_s19 = sshll.u32 %s2363_s18, 4  ;;  %p2316_p0 = scmp.ne.s32.totalorder %s2652_s2, %s2315_s22  ;;  %s22_s19 = int_to_ptr.vmem [resolvable:$true] %s21_s19 }
   0x3   :  { %p2319_p1 = scmp.lt.u32.totalorder %s2315_s22, %s2652_s2 }
   0x5   :  { %p2321_p2 = pnand %p2319_p1, %p2316_p0 }
   0x7   :  { %2324 = shalt.err (!%p2321_p2)
}
   0x8   :  { %s2325_s27 = scalar_lea.vmem %s22_s19, 512  ;;  %p2330_p4 = scmp.lt.s32.totalorder %s22_s19, %s22_s19 }
   0x9   :  { %p2326_p3 = scmp.ne.s32.totalorder %s22_s19, %s2325_s27  ;;  %p2331_p5 = scmp.lt.s32.totalorder %s2325_s27, %s2325_s27 }
   0xb   :  { %p2332_p6 = por %p2331_p5, %p2330_p4 }
   0xd   :  { %p2333_p7 = pnand %p2332_p6, %p2326_p3 }
   0xf   :  { %2336 = shalt.err (!%p2333_p7)
}
  0x10   :  { %s2364_s28 = smov 128   ;;  %s2365_s29 = smov 8  }
  0x11   :  { %27 = dma.hbm_to_vmem [thread:$0]  %s2652_s2, 512, %s22_s19, [#allocation3], %s2364_s28, %s2364_s28, %s2365_s29  }
  0x12   :  { %2359 = dma.done.wait [#allocation3], 512  }
  0x13   :  { %2360 = vsyncadd [#allocation3], 4294966784  ;;  %v2366_v0 = vmov 0.0|0.0   ;;  %vm2367_vm0 = vmmov 0   ;;  %v2368_v1 = vmov 0.0   ;;  %v2369_v2 = vmov 0  }
  0x14   :  { %2079 = vmatprep.subr.bf16.mxu0 %v2366_v0  ;;  %1911 = vmatprep.mubr.msk.f32.mxu0 %vm2367_vm0, %v2368_v1  ;;  %v67_v3 = vld [vmem:[#allocation2] sm:$0xff]  ;;  %v68_v4 = vld [vmem:[#allocation2 + $0x8] sm:$0xff]  ;;  %v69_v5 = vld [vmem:[#allocation2 + $0x10] sm:$0xff]  ;;  %v60_v10 = vlaneseq  ;;  %vm71_vm1 = vcmask 261120   ;;  %vm1774_vm2 = vcmask 261127  }
  0x15   :  { %2185 = vset.pattern.permute.xlu0 %v2369_v2  ;;  %2085 = vmatprep.subr.bf16.mxu1 %v2366_v0  ;;  %v2421_v6 = vpack.c.bf16 %v68_v4, %v67_v3  ;;  %v70_v7 = vld [vmem:[#allocation2 + $0x18] sm:$0xff]  ;;  %v38_v8 = vld [vmem:[%s2650_s0] sm:$0xff] }
  0x16   :  { %1922 = vmatprep.mubr.msk.f32.mxu1 %vm2367_vm0, %v2368_v1  ;;  %2186 = vset.pattern.permute.xlu1 %v2369_v2  ;;  %v2427_v9 = vpack.c.bf16 %v70_v7, %v69_v5  ;;  %v61_v11 = vshrl.u32 %v60_v10, 7  ;;  %v35_v12 = vld [vmem:[%s2653_s3] sm:$0x1]  ;;  %s2370_s3 = smov 64  }
  0x17   :  { %43 = vperm.xlu0 %2185, %v38_v8   ;;  %2081 = vmatpush3.bf16.msra.mxu0 %v2421_v6  ;;  %v36_v13 = vld [vmem:[%s2654_s4] sm:$0x1] }
  0x18   :  { %2087 = vmatpush3.bf16.msra.mxu1 %v2421_v6  ;;  %2082 = vmatprep.subr.bf16.mxu0 %v2366_v0  ;;  %v62_v14 = vsub.s32 0, %v61_v11  ;;  %v37_v15 = vadd.f32 %v36_v13, %v35_v12  ;;  %v2452_v16 = vld [vmem:[%s2651_s1] ss:$0 sm:$0xff]  ;;  %s2371_s1 = smov 32  }
  0x19   :  { %2088 = vmatprep.subr.bf16.mxu1 %v2366_v0 }
  0x1a   :  { %v2455_v19 = vrot.slane %v37_v15, %v62_v14 }
  0x1b   :  { %2084 = vmatpush3.bf16.msra.mxu0 %v2427_v9 }
  0x1c   :  { %2090 = vmatpush3.bf16.msra.mxu1 %v2427_v9  ;;  %2091 = vmatprep.subr.bf16.mxu0 %v2366_v0 }
  0x1d   :  { %2097 = vmatprep.subr.bf16.mxu1 %v2366_v0 }
  0x1e   :  { %1912 = vmatmul.mubr.f32.vlgmr.msra.gmra.mrb[0].mxu0 %v2368_v1 }
  0x1f   :  { %2093 = vmatpush3.bf16.msra.mxu0 %v2421_v6  ;;  %1933 = vmatprep.mubr.msk.f32.mxu0 %vm2367_vm0, %v2368_v1 }
  0x20   :  { %2094 = vmatprep.subr.bf16.mxu0 %v2366_v0 }
  0x23   :  { %2096 = vmatpush3.bf16.msra.mxu0 %v2427_v9 }
  0x24   :  { %2103 = vmatprep.subr.bf16.mxu0 %v2366_v0 }
  0x96   :  { %v44_v17 = vpop.permute.xlu0 %43 }
  0x97   :  { %v57_v18 = vmul.f32 %v2452_v16, %v44_v17 }
  0x99   :  { %v2458_v20 = vadd.f32 %v2455_v19, %v57_v18 }
  0xf1   :  { %v141_v21 = vpop.f32.mrb[0].mxu0 }
  0xf2   :  { %v145_v22 = vadd.f32 %v141_v21, %v2458_v20  ;;  %v1913_v23 = vpop.f32.mrb[1].mxu0 }
  0xf4   :  { %2187 = vtanh.f32 %v145_v22  ;;  %v1792_v25 = vmul.f32 -1.442695, %v145_v22 }
  0xf6   :  { %2189 = vpow2.f32 %v1792_v25 }
  0xfe   :  { %v2188_v24 = vpop.eup %2187 }
  0xff   :  { %155 = vrot.lane.b32.xlu0 %v2188_v24, %s2370_s3 }
 0x100   :  { %v2190_v26 = vpop.eup %2189 }
 0x101   :  { %v149_v27 = vadd.f32 1.0, %v2190_v26 }
 0x103   :  { %2191 = vrcp.f32 %v149_v27 }
 0x10d   :  { %v2192_v28 = vpop.eup %2191 }
 0x10e   :  { %v153_v31 = vmul.f32 0.0, %v2192_v28 }
 0x171   :  { %v156_v29 = vpop.permute.xlu0 %155 }
 0x172   :  { %v158_v30 = vmul.f32 %v2192_v28, %v156_v29 }
 0x174   :  { %160 = vrot.lane.b32.xlu1 %v158_v30, %s2371_s1 }
 0x1e6   :  { %v161_v32 = vpop.permute.xlu1 %160 }
 0x1e7   :  { %v163_v33 = vadd.f32 %v161_v32, %v153_v31 }
 0x1e9   :  { %2193 = vtanh.f32 %v163_v33  ;;  %v257_v49 = vrot.slane %v163_v33, 7 }
 0x1f3   :  { %v2194_v34 = vpop.eup %2193 }
 0x1f4   :  { %166 = vrot.lane.b32.xlu1 %v2194_v34, %s2370_s3 }
 0x266   :  { %v167_v35 = vpop.permute.xlu1 %166 }
 0x267   :  { %v169_v36 = vmul.f32 %v2192_v28, %v167_v35 }
 0x269   :  { %171 = vrot.lane.b32.xlu0 %v169_v36, %s2371_s1 }
 0x2db   :  { %v172_v37 = vpop.permute.xlu0 %171 }
 0x2dc   :  { %1923 = vmatmul.mubr.msk.f32.vlgmr.msra.gmra.mrb[0].mxu1 %vm71_vm1, %v172_v37 }
 0x2dd   :  { %2099 = vmatpush3.bf16.msra.mxu1 %v2421_v6  ;;  %1944 = vmatprep.mubr.msk.f32.mxu1 %vm2367_vm0, %v2368_v1 }
 0x2de   :  { %2100 = vmatprep.subr.bf16.mxu1 %v2366_v0 }
 0x2e1   :  { %2102 = vmatpush3.bf16.msra.mxu1 %v2427_v9 }
 0x2e2   :  { %2109 = vmatprep.subr.bf16.mxu1 %v2366_v0 }
 0x3af   :  { %v241_v38 = vpop.f32.mrb[0].mxu1 }
 0x3b0   :  { %v246_v39 = vrot.slane %v241_v38, 7  ;;  %v1924_v40 = vpop.f32.mrb[1].mxu1 }
 0x3b2   :  { %v248_v41 = vadd.f32 %v246_v39, %v2458_v20 }
 0x3b4   :  { %2195 = vtanh.f32 %v248_v41  ;;  %v1794_v43 = vmul.f32 -1.442695, %v248_v41 }
 0x3b6   :  { %2197 = vpow2.f32 %v1794_v43 }
 0x3be   :  { %v2196_v42 = vpop.eup %2195 }
 0x3bf   :  { %261 = vrot.lane.b32.xlu1 %v2196_v42, %s2370_s3 }
 0x3c0   :  { %v2198_v44 = vpop.eup %2197 }
 0x3c1   :  { %v252_v45 = vadd.f32 1.0, %v2198_v44 }
 0x3c3   :  { %2199 = vrcp.f32 %v252_v45 }
 0x3cd   :  { %v2200_v46 = vpop.eup %2199 }
 0x3ce   :  { %v259_v50 = vmul.f32 %v2200_v46, %v257_v49 }
 0x431   :  { %v262_v47 = vpop.permute.xlu1 %261 }
 0x432   :  { %v264_v48 = vmul.f32 %v2200_v46, %v262_v47 }
 0x434   :  { %266 = vrot.lane.b32.xlu0 %v264_v48, %s2371_s1 }
 0x4a6   :  { %v267_v51 = vpop.permute.xlu0 %266 }
 0x4a7   :  { %v269_v52 = vadd.f32 %v267_v51, %v259_v50 }
 0x4a9   :  { %2201 = vtanh.f32 %v269_v52  ;;  %v364_v8 = vrot.slane %v269_v52, 7 }
 0x4b3   :  { %v2202_v53 = vpop.eup %2201 }
 0x4b4   :  { %272 = vrot.lane.b32.xlu1 %v2202_v53, %s2370_s3 }
 0x526   :  { %v273_v54 = vpop.permute.xlu1 %272 }
 0x527   :  { %v275_v55 = vmul.f32 %v2200_v46, %v273_v54 }
 0x529   :  { %v277_v56 = vrot.slane %v275_v55, 1 }
 0x52b   :  { %278 = vrot.lane.b32.xlu0 %v277_v56, %s2371_s1 }
 0x59d   :  { %v279_v57 = vpop.permute.xlu0 %278 }
 0x59e   :  { %1934 = vmatmul.mubr.msk.f32.vlgmr.msra.gmra.mrb[2].mxu0 %vm71_vm1, %v279_v57 }
 0x59f   :  { %2105 = vmatpush3.bf16.msra.mxu0 %v2421_v6  ;;  %1955 = vmatprep.mubr.msk.f32.mxu0 %vm2367_vm0, %v2368_v1 }
 0x5a0   :  { %2106 = vmatprep.subr.bf16.mxu0 %v2366_v0 }
 0x5a3   :  { %2108 = vmatpush3.bf16.msra.mxu0 %v2427_v9 }
 0x5a4   :  { %2115 = vmatprep.subr.bf16.mxu0 %v2366_v0 }
 0x671   :  { %v348_v58 = vpop.f32.mrb[2].mxu0 }
 0x672   :  { %v353_v59 = vrot.slane %v348_v58, 6  ;;  %v1935_v60 = vpop.f32.mrb[3].mxu0 }
 0x674   :  { %v355_v61 = vadd.f32 %v353_v59, %v2458_v20 }
 0x676   :  { %2203 = vtanh.f32 %v355_v61  ;;  %v1796_v63 = vmul.f32 -1.442695, %v355_v61 }
 0x678   :  { %2205 = vpow2.f32 %v1796_v63 }
 0x680   :  { %v2204_v62 = vpop.eup %2203 }
 0x681   :  { %368 = vrot.lane.b32.xlu1 %v2204_v62, %s2370_s3 }
 0x682   :  { %v2206_v2 = vpop.eup %2205 }
 0x683   :  { %v359_v3 = vadd.f32 1.0, %v2206_v2 }
 0x685   :  { %2207 = vrcp.f32 %v359_v3 }
 0x68f   :  { %v2208_v4 = vpop.eup %2207 }
 0x690   :  { %v366_v10 = vmul.f32 %v2208_v4, %v364_v8 }
 0x6f3   :  { %v369_v5 = vpop.permute.xlu1 %368 }
 0x6f4   :  { %v371_v7 = vmul.f32 %v2208_v4, %v369_v5 }
 0x6f6   :  { %373 = vrot.lane.b32.xlu0 %v371_v7, %s2371_s1 }
 0x768   :  { %v374_v11 = vpop.permute.xlu0 %373 }
 0x769   :  { %v376_v12 = vadd.f32 %v374_v11, %v366_v10 }
 0x76b   :  { %2209 = vtanh.f32 %v376_v12  ;;  %v471_v32 = vrot.slane %v376_v12, 7 }
 0x775   :  { %v2210_v13 = vpop.eup %2209 }
 0x776   :  { %379 = vrot.lane.b32.xlu1 %v2210_v13, %s2370_s3 }
 0x7e8   :  { %v380_v14 = vpop.permute.xlu1 %379 }
 0x7e9   :  { %v382_v15 = vmul.f32 %v2208_v4, %v380_v14 }
 0x7eb   :  { %v384_v17 = vrot.slane %v382_v15, 2 }
 0x7ed   :  { %385 = vrot.lane.b32.xlu0 %v384_v17, %s2371_s1 }
 0x85f   :  { %v386_v18 = vpop.permute.xlu0 %385 }
 0x860   :  { %1945 = vmatmul.mubr.msk.f32.vlgmr.msra.gmra.mrb[2].mxu1 %vm71_vm1, %v386_v18 }
 0x861   :  { %2111 = vmatpush3.bf16.msra.mxu1 %v2421_v6  ;;  %1966 = vmatprep.mubr.msk.f32.mxu1 %vm2367_vm0, %v2368_v1 }
 0x862   :  { %2112 = vmatprep.subr.bf16.mxu1 %v2366_v0 }
 0x865   :  { %2114 = vmatpush3.bf16.msra.mxu1 %v2427_v9 }
 0x866   :  { %2121 = vmatprep.subr.bf16.mxu1 %v2366_v0 }
 0x933   :  { %v455_v21 = vpop.f32.mrb[2].mxu1 }
 0x934   :  { %v460_v22 = vrot.slane %v455_v21, 5  ;;  %v1946_v23 = vpop.f32.mrb[3].mxu1 }
 0x936   :  { %v462_v24 = vadd.f32 %v460_v22, %v2458_v20 }
 0x938   :  { %2211 = vtanh.f32 %v462_v24  ;;  %v1798_v26 = vmul.f32 -1.442695, %v462_v24 }
 0x93a   :  { %2213 = vpow2.f32 %v1798_v26 }
 0x942   :  { %v2212_v25 = vpop.eup %2211 }
 0x943   :  { %475 = vrot.lane.b32.xlu1 %v2212_v25, %s2370_s3 }
 0x944   :  { %v2214_v27 = vpop.eup %2213 }
 0x945   :  { %v466_v28 = vadd.f32 1.0, %v2214_v27 }
 0x947   :  { %2215 = vrcp.f32 %v466_v28 }
 0x951   :  { %v2216_v29 = vpop.eup %2215 }
 0x952   :  { %v473_v33 = vmul.f32 %v2216_v29, %v471_v32 }
 0x9b5   :  { %v476_v30 = vpop.permute.xlu1 %475 }
 0x9b6   :  { %v478_v31 = vmul.f32 %v2216_v29, %v476_v30 }
 0x9b8   :  { %480 = vrot.lane.b32.xlu0 %v478_v31, %s2371_s1 }
 0xa2a   :  { %v481_v34 = vpop.permute.xlu0 %480 }
 0xa2b   :  { %v483_v35 = vadd.f32 %v481_v34, %v473_v33 }
 0xa2d   :  { %2217 = vtanh.f32 %v483_v35  ;;  %v578_v52 = vrot.slane %v483_v35, 7 }
 0xa37   :  { %v2218_v36 = vpop.eup %2217 }
 0xa38   :  { %486 = vrot.lane.b32.xlu1 %v2218_v36, %s2370_s3 }
 0xaaa   :  { %v487_v37 = vpop.permute.xlu1 %486 }
 0xaab   :  { %v489_v38 = vmul.f32 %v2216_v29, %v487_v37 }
 0xaad   :  { %v491_v39 = vrot.slane %v489_v38, 3 }
 0xaaf   :  { %492 = vrot.lane.b32.xlu0 %v491_v39, %s2371_s1 }
 0xb21   :  { %v493_v40 = vpop.permute.xlu0 %492 }
 0xb22   :  { %1956 = vmatmul.mubr.msk.f32.vlgmr.msra.gmra.mrb[4].mxu0 %vm71_vm1, %v493_v40 }
 0xb23   :  { %2117 = vmatpush3.bf16.msra.mxu0 %v2421_v6  ;;  %1977 = vmatprep.mubr.msk.f32.mxu0 %vm2367_vm0, %v2368_v1 }
 0xb24   :  { %2118 = vmatprep.subr.bf16.mxu0 %v2366_v0 }
 0xb27   :  { %2120 = vmatpush3.bf16.msra.mxu0 %v2427_v9 }
 0xb28   :  { %2127 = vmatprep.subr.bf16.mxu0 %v2366_v0 }
 0xbf5   :  { %v562_v41 = vpop.f32.mrb[4].mxu0 }
 0xbf6   :  { %v567_v42 = vrot.slane %v562_v41, 4  ;;  %v1957_v43 = vpop.f32.mrb[5].mxu0 }
 0xbf8   :  { %v569_v44 = vadd.f32 %v567_v42, %v2458_v20 }
 0xbfa   :  { %2219 = vtanh.f32 %v569_v44  ;;  %v1800_v46 = vmul.f32 -1.442695, %v569_v44 }
 0xbfc   :  { %2221 = vpow2.f32 %v1800_v46 }
 0xc04   :  { %v2220_v45 = vpop.eup %2219 }
 0xc05   :  { %582 = vrot.lane.b32.xlu1 %v2220_v45, %s2370_s3 }
 0xc06   :  { %v2222_v47 = vpop.eup %2221 }
 0xc07   :  { %v573_v48 = vadd.f32 1.0, %v2222_v47 }
 0xc09   :  { %2223 = vrcp.f32 %v573_v48 }
 0xc13   :  { %v2224_v49 = vpop.eup %2223 }
 0xc14   :  { %v580_v53 = vmul.f32 %v2224_v49, %v578_v52 }
 0xc77   :  { %v583_v50 = vpop.permute.xlu1 %582 }
 0xc78   :  { %v585_v51 = vmul.f32 %v2224_v49, %v583_v50 }
 0xc7a   :  { %587 = vrot.lane.b32.xlu0 %v585_v51, %s2371_s1 }
 0xcec   :  { %v588_v54 = vpop.permute.xlu0 %587 }
 0xced   :  { %v590_v55 = vadd.f32 %v588_v54, %v580_v53 }
 0xcef   :  { %2225 = vtanh.f32 %v590_v55  ;;  %v685_v12 = vrot.slane %v590_v55, 7 }
 0xcf9   :  { %v2226_v56 = vpop.eup %2225 }
 0xcfa   :  { %593 = vrot.lane.b32.xlu1 %v2226_v56, %s2370_s3 }
 0xd6c   :  { %v594_v57 = vpop.permute.xlu1 %593 }
 0xd6d   :  { %v596_v58 = vmul.f32 %v2224_v49, %v594_v57 }
 0xd6f   :  { %v598_v59 = vrot.slane %v596_v58, 4 }
 0xd71   :  { %599 = vrot.lane.b32.xlu0 %v598_v59, %s2371_s1  ;;  %v39_v59 = vld [vmem:[%s2650_s0 + $0x8] sm:$0xff]  ;;  %s2372_s0 = smov [#allocation5]  }
 0xd72   :  { %s1782_s15 = sshll.u32 %s2372_s0, 4  ;;  %s1783_s15 = int_to_ptr.vmem [resolvable:$true] %s1782_s15 }
 0xd73   :  { %s2337_s16 = scalar_lea.vmem %s1783_s15, 16  ;;  %s2341_s17 = scalar_lea.vmem %s1783_s15, 32 }
 0xd74   :  { %p2338_p8 = scmp.ne.s32.totalorder %s1783_s15, %s2337_s16  ;;  %p2342_p9 = scmp.lt.s32.totalorder %s1783_s15, %s1783_s15 }
 0xd75   :  { %p2343_p10 = scmp.lt.s32.totalorder %s2341_s17, %s2337_s16 }
 0xd77   :  { %p2344_p11 = por %p2343_p10, %p2342_p9 }
 0xd79   :  { %p2345_p12 = pnand %p2344_p11, %p2338_p8 }
 0xde3   :  { %v600_v60 = vpop.permute.xlu0 %599 }
 0xde4   :  { %1967 = vmatmul.mubr.msk.f32.vlgmr.msra.gmra.mrb[4].mxu1 %vm71_vm1, %v600_v60 }
 0xde5   :  { %2123 = vmatpush3.bf16.msra.mxu1 %v2421_v6  ;;  %1988 = vmatprep.mubr.msk.f32.mxu1 %vm2367_vm0, %v2368_v1 }
 0xde6   :  { %2124 = vmatprep.subr.bf16.mxu1 %v2366_v0 }
 0xde9   :  { %2126 = vmatpush3.bf16.msra.mxu1 %v2427_v9 }
 0xdea   :  { %2133 = vmatprep.subr.bf16.mxu1 %v2366_v0 }
 0xeb7   :  { %v669_v61 = vpop.f32.mrb[4].mxu1 }
 0xeb8   :  { %v674_v62 = vrot.slane %v669_v61, 3  ;;  %v1968_v63 = vpop.f32.mrb[5].mxu1 }
 0xeba   :  { %v676_v2 = vadd.f32 %v674_v62, %v2458_v20 }
 0xebc   :  { %2227 = vtanh.f32 %v676_v2  ;;  %v1802_v4 = vmul.f32 -1.442695, %v676_v2 }
 0xebe   :  { %2229 = vpow2.f32 %v1802_v4 }
 0xec6   :  { %v2228_v3 = vpop.eup %2227 }
 0xec7   :  { %689 = vrot.lane.b32.xlu1 %v2228_v3, %s2370_s3 }
 0xec8   :  { %v2230_v5 = vpop.eup %2229 }
 0xec9   :  { %v680_v7 = vadd.f32 1.0, %v2230_v5 }
 0xecb   :  { %2231 = vrcp.f32 %v680_v7 }
 0xed5   :  { %v2232_v8 = vpop.eup %2231 }
 0xed6   :  { %v687_v13 = vmul.f32 %v2232_v8, %v685_v12 }
 0xf39   :  { %v690_v10 = vpop.permute.xlu1 %689 }
 0xf3a   :  { %v692_v11 = vmul.f32 %v2232_v8, %v690_v10 }
 0xf3c   :  { %694 = vrot.lane.b32.xlu0 %v692_v11, %s2371_s1 }
 0xfae   :  { %v695_v14 = vpop.permute.xlu0 %694 }
 0xfaf   :  { %v697_v15 = vadd.f32 %v695_v14, %v687_v13 }
 0xfb1   :  { %2233 = vtanh.f32 %v697_v15  ;;  %v792_v35 = vrot.slane %v697_v15, 7 }
 0xfbb   :  { %v2234_v17 = vpop.eup %2233 }
 0xfbc   :  { %700 = vrot.lane.b32.xlu1 %v2234_v17, %s2370_s3 }
0x102e   :  { %v701_v18 = vpop.permute.xlu1 %700 }
0x102f   :  { %v703_v21 = vmul.f32 %v2232_v8, %v701_v18 }
0x1031   :  { %v705_v22 = vrot.slane %v703_v21, 5 }
0x1033   :  { %706 = vrot.lane.b32.xlu0 %v705_v22, %s2371_s1 }
0x10a5   :  { %v707_v23 = vpop.permute.xlu0 %706 }
0x10a6   :  { %1978 = vmatmul.mubr.msk.f32.vlgmr.msra.gmra.mrb[6].mxu0 %vm71_vm1, %v707_v23 }
0x10a7   :  { %2129 = vmatpush3.bf16.msra.mxu0 %v2421_v6  ;;  %1999 = vmatprep.mubr.msk.f32.mxu0 %vm2367_vm0, %v2368_v1 }
0x10a8   :  { %2130 = vmatprep.subr.bf16.mxu0 %v2366_v0 }
0x10ab   :  { %2132 = vmatpush3.bf16.msra.mxu0 %v2427_v9 }
0x10ac   :  { %2139 = vmatprep.subr.bf16.mxu0 %v2366_v0 }
0x1179   :  { %v776_v24 = vpop.f32.mrb[6].mxu0 }
0x117a   :  { %v781_v25 = vrot.slane %v776_v24, 2  ;;  %v1979_v26 = vpop.f32.mrb[7].mxu0 }
0x117c   :  { %v783_v27 = vadd.f32 %v781_v25, %v2458_v20 }
0x117e   :  { %2235 = vtanh.f32 %v783_v27  ;;  %v1804_v29 = vmul.f32 -1.442695, %v783_v27 }
0x1180   :  { %2237 = vpow2.f32 %v1804_v29 }
0x1188   :  { %v2236_v28 = vpop.eup %2235 }
0x1189   :  { %796 = vrot.lane.b32.xlu1 %v2236_v28, %s2370_s3 }
0x118a   :  { %v2238_v30 = vpop.eup %2237 }
0x118b   :  { %v787_v31 = vadd.f32 1.0, %v2238_v30 }
0x118d   :  { %2239 = vrcp.f32 %v787_v31 }
0x1197   :  { %v2240_v32 = vpop.eup %2239 }
0x1198   :  { %v794_v36 = vmul.f32 %v2240_v32, %v792_v35 }
0x11fb   :  { %v797_v33 = vpop.permute.xlu1 %796 }
0x11fc   :  { %v799_v34 = vmul.f32 %v2240_v32, %v797_v33 }
0x11fe   :  { %801 = vrot.lane.b32.xlu0 %v799_v34, %s2371_s1 }
0x1270   :  { %v802_v37 = vpop.permute.xlu0 %801 }
0x1271   :  { %v804_v38 = vadd.f32 %v802_v37, %v794_v36 }
0x1273   :  { %2241 = vtanh.f32 %v804_v38  ;;  %v899_v55 = vrot.slane %v804_v38, 7 }
0x127d   :  { %v2242_v39 = vpop.eup %2241 }
0x127e   :  { %807 = vrot.lane.b32.xlu1 %v2242_v39, %s2370_s3 }
0x12f0   :  { %v808_v40 = vpop.permute.xlu1 %807 }
0x12f1   :  { %v810_v41 = vmul.f32 %v2240_v32, %v808_v40 }
0x12f3   :  { %v812_v42 = vrot.slane %v810_v41, 6 }
0x12f5   :  { %813 = vrot.lane.b32.xlu0 %v812_v42, %s2371_s1 }
0x1367   :  { %v814_v43 = vpop.permute.xlu0 %813 }
0x1368   :  { %1989 = vmatmul.mubr.msk.f32.vlgmr.msra.gmra.mrb[6].mxu1 %vm71_vm1, %v814_v43 }
0x1369   :  { %2135 = vmatpush3.bf16.msra.mxu1 %v2421_v6  ;;  %2010 = vmatprep.mubr.msk.f32.mxu1 %vm2367_vm0, %v2368_v1 }
0x136a   :  { %2136 = vmatprep.subr.bf16.mxu1 %v2366_v0 }
0x136d   :  { %2138 = vmatpush3.bf16.msra.mxu1 %v2427_v9 }
0x136e   :  { %2145 = vmatprep.subr.bf16.mxu1 %v2366_v0 }
0x143b   :  { %v883_v44 = vpop.f32.mrb[6].mxu1 }
0x143c   :  { %v888_v45 = vrot.slane %v883_v44, 1  ;;  %v1990_v46 = vpop.f32.mrb[7].mxu1 }
0x143e   :  { %v890_v47 = vadd.f32 %v888_v45, %v2458_v20 }
0x1440   :  { %2243 = vtanh.f32 %v890_v47  ;;  %v1806_v49 = vmul.f32 -1.442695, %v890_v47 }
0x1442   :  { %2245 = vpow2.f32 %v1806_v49 }
0x144a   :  { %v2244_v48 = vpop.eup %2243 }
0x144b   :  { %903 = vrot.lane.b32.xlu1 %v2244_v48, %s2370_s3 }
0x144c   :  { %v2246_v50 = vpop.eup %2245 }
0x144d   :  { %v894_v51 = vadd.f32 1.0, %v2246_v50 }
0x144f   :  { %2247 = vrcp.f32 %v894_v51 }
0x1459   :  { %v2248_v52 = vpop.eup %2247 }
0x145a   :  { %v901_v56 = vmul.f32 %v2248_v52, %v899_v55 }
0x14bd   :  { %v904_v53 = vpop.permute.xlu1 %903 }
0x14be   :  { %v906_v54 = vmul.f32 %v2248_v52, %v904_v53 }
0x14c0   :  { %908 = vrot.lane.b32.xlu0 %v906_v54, %s2371_s1 }
0x1532   :  { %v909_v57 = vpop.permute.xlu0 %908 }
0x1533   :  { %v911_v58 = vadd.f32 %v909_v57, %v901_v56 }
0x1535   :  { %2249 = vtanh.f32 %v911_v58 }
0x153f   :  { %v2250_v20 = vpop.eup %2249 }
0x1540   :  { %914 = vrot.lane.b32.xlu1 %v2250_v20, %s2370_s3 }
0x1544   :  { %48 = vperm.xlu1 %2186, %v39_v59  }
0x15b2   :  { %v915_v60 = vpop.permute.xlu1 %914 }
0x15b3   :  { %v917_v61 = vmul.f32 %v2248_v52, %v915_v60 }
0x15b5   :  { %v919_v62 = vrot.slane %v917_v61, 7 }
0x15b7   :  { %920 = vrot.lane.b32.xlu0 %v919_v62, %s2371_s1 }
0x15c3   :  { %v49_v2 = vpop.permute.xlu1 %48 }
0x15c4   :  { %v58_v3 = vmul.f32 %v2452_v16, %v49_v2  ;;  %v1003_v16 = vrot.slane %v911_v58, 7 }
0x15c6   :  { %v2561_v4 = vadd.f32 %v2455_v19, %v58_v3 }
0x1629   :  { %v921_v63 = vpop.permute.xlu0 %920 }
0x162a   :  { %2000 = vmatmul.mubr.msk.f32.vlgmr.msra.gmra.mrb[8].mxu0 %vm71_vm1, %v921_v63 }
0x162b   :  { %2141 = vmatpush3.bf16.msra.mxu0 %v2421_v6  ;;  %2021 = vmatprep.mubr.msk.f32.mxu0 %vm2367_vm0, %v2368_v1 }
0x162c   :  { %2142 = vmatprep.subr.bf16.mxu0 %v2366_v0 }
0x162f   :  { %2144 = vmatpush3.bf16.msra.mxu0 %v2427_v9 }
0x1630   :  { %2151 = vmatprep.subr.bf16.mxu0 %v2366_v0 }
0x16fd   :  { %v990_v5 = vpop.f32.mrb[8].mxu0 }
0x16fe   :  { %v994_v7 = vadd.f32 %v990_v5, %v2561_v4  ;;  %v2001_v8 = vpop.f32.mrb[9].mxu0 }
0x1700   :  { %2251 = vtanh.f32 %v994_v7  ;;  %v1808_v11 = vmul.f32 -1.442695, %v994_v7 }
0x1702   :  { %2253 = vpow2.f32 %v1808_v11 }
0x170a   :  { %v2252_v10 = vpop.eup %2251 }
0x170b   :  { %1007 = vrot.lane.b32.xlu0 %v2252_v10, %s2370_s3 }
0x170c   :  { %v2254_v12 = vpop.eup %2253 }
0x170d   :  { %v998_v13 = vadd.f32 1.0, %v2254_v12 }
0x170f   :  { %2255 = vrcp.f32 %v998_v13 }
0x1719   :  { %v2256_v14 = vpop.eup %2255 }
0x171a   :  { %v1005_v19 = vmul.f32 %v2256_v14, %v1003_v16 }
0x177d   :  { %v1008_v15 = vpop.permute.xlu0 %1007 }
0x177e   :  { %v1010_v17 = vmul.f32 %v2256_v14, %v1008_v15 }
0x1780   :  { %1012 = vrot.lane.b32.xlu1 %v1010_v17, %s2371_s1 }
0x17f2   :  { %v1013_v18 = vpop.permute.xlu1 %1012 }
0x17f3   :  { %v1015_v21 = vadd.f32 %v1013_v18, %v1005_v19 }
0x17f5   :  { %2257 = vtanh.f32 %v1015_v21  ;;  %v1109_v37 = vrot.slane %v1015_v21, 7 }
0x17ff   :  { %v2258_v22 = vpop.eup %2257 }
0x1800   :  { %1018 = vrot.lane.b32.xlu0 %v2258_v22, %s2370_s3 }
0x1872   :  { %v1019_v23 = vpop.permute.xlu0 %1018 }
0x1873   :  { %v1021_v24 = vmul.f32 %v2256_v14, %v1019_v23 }
0x1875   :  { %1023 = vrot.lane.b32.xlu1 %v1021_v24, %s2371_s1 }
0x18e7   :  { %v1024_v25 = vpop.permute.xlu1 %1023 }
0x18e8   :  { %2011 = vmatmul.mubr.msk.f32.vlgmr.msra.gmra.mrb[8].mxu1 %vm71_vm1, %v1024_v25 }
0x18e9   :  { %2147 = vmatpush3.bf16.msra.mxu1 %v2421_v6  ;;  %2032 = vmatprep.mubr.msk.f32.mxu1 %vm2367_vm0, %v2368_v1 }
0x18ea   :  { %2148 = vmatprep.subr.bf16.mxu1 %v2366_v0 }
0x18ed   :  { %2150 = vmatpush3.bf16.msra.mxu1 %v2427_v9 }
0x18ee   :  { %2157 = vmatprep.subr.bf16.mxu1 %v2366_v0 }
0x19bb   :  { %v1093_v26 = vpop.f32.mrb[8].mxu1 }
0x19bc   :  { %v1098_v27 = vrot.slane %v1093_v26, 7  ;;  %v2012_v28 = vpop.f32.mrb[9].mxu1 }
0x19be   :  { %v1100_v29 = vadd.f32 %v1098_v27, %v2561_v4 }
0x19c0   :  { %2259 = vtanh.f32 %v1100_v29  ;;  %v1810_v31 = vmul.f32 -1.442695, %v1100_v29 }
0x19c2   :  { %2261 = vpow2.f32 %v1810_v31 }
0x19ca   :  { %v2260_v30 = vpop.eup %2259 }
0x19cb   :  { %1113 = vrot.lane.b32.xlu0 %v2260_v30, %s2370_s3 }
0x19cc   :  { %v2262_v32 = vpop.eup %2261 }
0x19cd   :  { %v1104_v33 = vadd.f32 1.0, %v2262_v32 }
0x19cf   :  { %2263 = vrcp.f32 %v1104_v33 }
0x19d9   :  { %v2264_v34 = vpop.eup %2263 }
0x19da   :  { %v1111_v38 = vmul.f32 %v2264_v34, %v1109_v37 }
0x1a3d   :  { %v1114_v35 = vpop.permute.xlu0 %1113 }
0x1a3e   :  { %v1116_v36 = vmul.f32 %v2264_v34, %v1114_v35 }
0x1a40   :  { %1118 = vrot.lane.b32.xlu1 %v1116_v36, %s2371_s1 }
0x1ab2   :  { %v1119_v39 = vpop.permute.xlu1 %1118 }
0x1ab3   :  { %v1121_v40 = vadd.f32 %v1119_v39, %v1111_v38 }
0x1ab5   :  { %2265 = vtanh.f32 %v1121_v40  ;;  %v1216_v57 = vrot.slane %v1121_v40, 7 }
0x1abf   :  { %v2266_v41 = vpop.eup %2265 }
0x1ac0   :  { %1124 = vrot.lane.b32.xlu0 %v2266_v41, %s2370_s3 }
0x1b32   :  { %v1125_v42 = vpop.permute.xlu0 %1124 }
0x1b33   :  { %v1127_v43 = vmul.f32 %v2264_v34, %v1125_v42 }
0x1b35   :  { %v1129_v44 = vrot.slane %v1127_v43, 1 }
0x1b37   :  { %1130 = vrot.lane.b32.xlu1 %v1129_v44, %s2371_s1 }
0x1ba9   :  { %v1131_v45 = vpop.permute.xlu1 %1130 }
0x1baa   :  { %2022 = vmatmul.mubr.msk.f32.vlgmr.msra.gmra.mrb[10].mxu0 %vm71_vm1, %v1131_v45 }
0x1bab   :  { %2153 = vmatpush3.bf16.msra.mxu0 %v2421_v6  ;;  %2043 = vmatprep.mubr.msk.f32.mxu0 %vm2367_vm0, %v2368_v1 }
0x1bac   :  { %2154 = vmatprep.subr.bf16.mxu0 %v2366_v0 }
0x1baf   :  { %2156 = vmatpush3.bf16.msra.mxu0 %v2427_v9 }
0x1bb0   :  { %2163 = vmatprep.subr.bf16.mxu0 %v2366_v0 }
0x1c7d   :  { %v1200_v46 = vpop.f32.mrb[10].mxu0 }
0x1c7e   :  { %v1205_v47 = vrot.slane %v1200_v46, 6  ;;  %v2023_v48 = vpop.f32.mrb[11].mxu0 }
0x1c80   :  { %v1207_v49 = vadd.f32 %v1205_v47, %v2561_v4 }
0x1c82   :  { %2267 = vtanh.f32 %v1207_v49  ;;  %v1812_v51 = vmul.f32 -1.442695, %v1207_v49 }
0x1c84   :  { %2269 = vpow2.f32 %v1812_v51 }
0x1c8c   :  { %v2268_v50 = vpop.eup %2267 }
0x1c8d   :  { %1220 = vrot.lane.b32.xlu0 %v2268_v50, %s2370_s3 }
0x1c8e   :  { %v2270_v52 = vpop.eup %2269 }
0x1c8f   :  { %v1211_v53 = vadd.f32 1.0, %v2270_v52 }
0x1c91   :  { %2271 = vrcp.f32 %v1211_v53 }
0x1c9b   :  { %v2272_v54 = vpop.eup %2271 }
0x1c9c   :  { %v1218_v58 = vmul.f32 %v2272_v54, %v1216_v57 }
0x1cff   :  { %v1221_v55 = vpop.permute.xlu0 %1220 }
0x1d00   :  { %v1223_v56 = vmul.f32 %v2272_v54, %v1221_v55 }
0x1d02   :  { %1225 = vrot.lane.b32.xlu1 %v1223_v56, %s2371_s1 }
0x1d74   :  { %v1226_v20 = vpop.permute.xlu1 %1225 }
0x1d75   :  { %v1228_v59 = vadd.f32 %v1226_v20, %v1218_v58 }
0x1d77   :  { %2273 = vtanh.f32 %v1228_v59  ;;  %v1323_v16 = vrot.slane %v1228_v59, 7 }
0x1d81   :  { %v2274_v60 = vpop.eup %2273 }
0x1d82   :  { %1231 = vrot.lane.b32.xlu0 %v2274_v60, %s2370_s3 }
0x1df4   :  { %v1232_v61 = vpop.permute.xlu0 %1231 }
0x1df5   :  { %v1234_v62 = vmul.f32 %v2272_v54, %v1232_v61 }
0x1df7   :  { %v1236_v63 = vrot.slane %v1234_v62, 2 }
0x1df9   :  { %1237 = vrot.lane.b32.xlu1 %v1236_v63, %s2371_s1 }
0x1e6b   :  { %v1238_v2 = vpop.permute.xlu1 %1237 }
0x1e6c   :  { %2033 = vmatmul.mubr.msk.f32.vlgmr.msra.gmra.mrb[10].mxu1 %vm71_vm1, %v1238_v2 }
0x1e6d   :  { %2159 = vmatpush3.bf16.msra.mxu1 %v2421_v6  ;;  %2054 = vmatprep.mubr.msk.f32.mxu1 %vm2367_vm0, %v2368_v1 }
0x1e6e   :  { %2160 = vmatprep.subr.bf16.mxu1 %v2366_v0 }
0x1e71   :  { %2162 = vmatpush3.bf16.msra.mxu1 %v2427_v9 }
0x1e72   :  { %2169 = vmatprep.subr.bf16.mxu1 %v2366_v0 }
0x1f3f   :  { %v1307_v3 = vpop.f32.mrb[10].mxu1 }
0x1f40   :  { %v1312_v5 = vrot.slane %v1307_v3, 5  ;;  %v2034_v7 = vpop.f32.mrb[11].mxu1 }
0x1f42   :  { %v1314_v8 = vadd.f32 %v1312_v5, %v2561_v4 }
0x1f44   :  { %2275 = vtanh.f32 %v1314_v8  ;;  %v1814_v11 = vmul.f32 -1.442695, %v1314_v8 }
0x1f46   :  { %2277 = vpow2.f32 %v1814_v11 }
0x1f4e   :  { %v2276_v10 = vpop.eup %2275 }
0x1f4f   :  { %1327 = vrot.lane.b32.xlu0 %v2276_v10, %s2370_s3 }
0x1f50   :  { %v2278_v12 = vpop.eup %2277 }
0x1f51   :  { %v1318_v13 = vadd.f32 1.0, %v2278_v12 }
0x1f53   :  { %2279 = vrcp.f32 %v1318_v13 }
0x1f5d   :  { %v2280_v14 = vpop.eup %2279 }
0x1f5e   :  { %v1325_v19 = vmul.f32 %v2280_v14, %v1323_v16 }
0x1fc1   :  { %v1328_v15 = vpop.permute.xlu0 %1327 }
0x1fc2   :  { %v1330_v17 = vmul.f32 %v2280_v14, %v1328_v15 }
0x1fc4   :  { %1332 = vrot.lane.b32.xlu1 %v1330_v17, %s2371_s1 }
0x2036   :  { %v1333_v18 = vpop.permute.xlu1 %1332 }
0x2037   :  { %v1335_v21 = vadd.f32 %v1333_v18, %v1325_v19 }
0x2039   :  { %2281 = vtanh.f32 %v1335_v21  ;;  %v1430_v38 = vrot.slane %v1335_v21, 7 }
0x2043   :  { %v2282_v22 = vpop.eup %2281 }
0x2044   :  { %1338 = vrot.lane.b32.xlu0 %v2282_v22, %s2370_s3 }
0x20b6   :  { %v1339_v23 = vpop.permute.xlu0 %1338 }
0x20b7   :  { %v1341_v24 = vmul.f32 %v2280_v14, %v1339_v23 }
0x20b9   :  { %v1343_v25 = vrot.slane %v1341_v24, 3 }
0x20bb   :  { %1344 = vrot.lane.b32.xlu1 %v1343_v25, %s2371_s1 }
0x212d   :  { %v1345_v26 = vpop.permute.xlu1 %1344 }
0x212e   :  { %2044 = vmatmul.mubr.msk.f32.vlgmr.msra.gmra.mrb[12].mxu0 %vm71_vm1, %v1345_v26 }
0x212f   :  { %2165 = vmatpush3.bf16.msra.mxu0 %v2421_v6  ;;  %2065 = vmatprep.mubr.msk.f32.mxu0 %vm2367_vm0, %v2368_v1 }
0x2130   :  { %2166 = vmatprep.subr.bf16.mxu0 %v2366_v0 }
0x2133   :  { %2168 = vmatpush3.bf16.msra.mxu0 %v2427_v9 }
0x2201   :  { %v1414_v27 = vpop.f32.mrb[12].mxu0 }
0x2202   :  { %v1419_v28 = vrot.slane %v1414_v27, 4  ;;  %v2045_v29 = vpop.f32.mrb[13].mxu0 }
0x2204   :  { %v1421_v30 = vadd.f32 %v1419_v28, %v2561_v4 }
0x2206   :  { %2283 = vtanh.f32 %v1421_v30  ;;  %v1816_v32 = vmul.f32 -1.442695, %v1421_v30 }
0x2208   :  { %2285 = vpow2.f32 %v1816_v32 }
0x2210   :  { %v2284_v31 = vpop.eup %2283 }
0x2211   :  { %1434 = vrot.lane.b32.xlu0 %v2284_v31, %s2370_s3 }
0x2212   :  { %v2286_v33 = vpop.eup %2285 }
0x2213   :  { %v1425_v34 = vadd.f32 1.0, %v2286_v33 }
0x2215   :  { %2287 = vrcp.f32 %v1425_v34 }
0x221f   :  { %v2288_v35 = vpop.eup %2287 }
0x2220   :  { %v1432_v39 = vmul.f32 %v2288_v35, %v1430_v38 }
0x2283   :  { %v1435_v36 = vpop.permute.xlu0 %1434 }
0x2284   :  { %v1437_v37 = vmul.f32 %v2288_v35, %v1435_v36 }
0x2286   :  { %1439 = vrot.lane.b32.xlu1 %v1437_v37, %s2371_s1 }
0x22f8   :  { %v1440_v40 = vpop.permute.xlu1 %1439 }
0x22f9   :  { %v1442_v41 = vadd.f32 %v1440_v40, %v1432_v39 }
0x22fb   :  { %2289 = vtanh.f32 %v1442_v41 }
0x2305   :  { %v2290_v42 = vpop.eup %2289 }
0x2306   :  { %1445 = vrot.lane.b32.xlu0 %v2290_v42, %s2370_s3 }
0x2378   :  { %v1446_v43 = vpop.permute.xlu0 %1445 }
0x2379   :  { %v1448_v44 = vmul.f32 %v2288_v35, %v1446_v43 }
0x237b   :  { %v1450_v45 = vrot.slane %v1448_v44, 4 }
0x237d   :  { %1451 = vrot.lane.b32.xlu1 %v1450_v45, %s2371_s1 }
0x23ef   :  { %v1452_v46 = vpop.permute.xlu1 %1451 }
0x23f0   :  { %2055 = vmatmul.mubr.msk.f32.vlgmr.msra.gmra.mrb[12].mxu1 %vm71_vm1, %v1452_v46 }
0x23f1   :  { %2171 = vmatpush3.bf16.msra.mxu1 %v2421_v6  ;;  %2076 = vmatprep.mubr.msk.f32.mxu1 %vm2367_vm0, %v2368_v1 }
0x23f2   :  { %2172 = vmatprep.subr.bf16.mxu1 %v2366_v0  ;;  %v1537_v0 = vrot.slane %v1442_v41, 7 }
0x23f5   :  { %2174 = vmatpush3.bf16.msra.mxu1 %v2427_v9 }
0x24c3   :  { %v1521_v47 = vpop.f32.mrb[12].mxu1 }
0x24c4   :  { %v1526_v48 = vrot.slane %v1521_v47, 3  ;;  %v2056_v49 = vpop.f32.mrb[13].mxu1 }
0x24c6   :  { %v1528_v50 = vadd.f32 %v1526_v48, %v2561_v4 }
0x24c8   :  { %2291 = vtanh.f32 %v1528_v50  ;;  %v1818_v52 = vmul.f32 -1.442695, %v1528_v50 }
0x24ca   :  { %2293 = vpow2.f32 %v1818_v52 }
0x24d2   :  { %v2292_v51 = vpop.eup %2291 }
0x24d3   :  { %1541 = vrot.lane.b32.xlu0 %v2292_v51, %s2370_s3 }
0x24d4   :  { %v2294_v53 = vpop.eup %2293 }
0x24d5   :  { %v1532_v6 = vadd.f32 1.0, %v2294_v53 }
0x24d7   :  { %2295 = vrcp.f32 %v1532_v6 }
0x24e1   :  { %v2296_v54 = vpop.eup %2295 }
0x24e2   :  { %v1539_v9 = vmul.f32 %v2296_v54, %v1537_v0 }
0x2545   :  { %v1542_v1 = vpop.permute.xlu0 %1541 }
0x2546   :  { %v1544_v55 = vmul.f32 %v2296_v54, %v1542_v1 }
0x2548   :  { %1546 = vrot.lane.b32.xlu1 %v1544_v55, %s2371_s1 }
0x25ba   :  { %v1547_v56 = vpop.permute.xlu1 %1546 }
0x25bb   :  { %v1549_v57 = vadd.f32 %v1547_v56, %v1539_v9 }
0x25bd   :  { %2297 = vtanh.f32 %v1549_v57  ;;  %v1644_v14 = vrot.slane %v1549_v57, 7 }
0x25c7   :  { %v2298_v58 = vpop.eup %2297 }
0x25c8   :  { %1552 = vrot.lane.b32.xlu0 %v2298_v58, %s2370_s3 }
0x263a   :  { %v1553_v20 = vpop.permute.xlu0 %1552 }
0x263b   :  { %v1555_v59 = vmul.f32 %v2296_v54, %v1553_v20 }
0x263d   :  { %v1557_v60 = vrot.slane %v1555_v59, 5 }
0x263f   :  { %1558 = vrot.lane.b32.xlu1 %v1557_v60, %s2371_s1 }
0x26b1   :  { %v1559_v61 = vpop.permute.xlu1 %1558 }
0x26b2   :  { %2066 = vmatmul.mubr.msk.f32.vlgmr.msra.gmra.mrb[14].mxu0 %vm71_vm1, %v1559_v61 }
0x2785   :  { %v1628_v62 = vpop.f32.mrb[14].mxu0 }
0x2786   :  { %v1633_v63 = vrot.slane %v1628_v62, 2  ;;  %v2067_v2 = vpop.f32.mrb[15].mxu0 }
0x2788   :  { %v1635_v3 = vadd.f32 %v1633_v63, %v2561_v4 }
0x278a   :  { %2299 = vtanh.f32 %v1635_v3  ;;  %v1820_v7 = vmul.f32 -1.442695, %v1635_v3 }
0x278c   :  { %2301 = vpow2.f32 %v1820_v7 }
0x2794   :  { %v2300_v5 = vpop.eup %2299 }
0x2795   :  { %1648 = vrot.lane.b32.xlu0 %v2300_v5, %s2370_s3 }
0x2796   :  { %v2302_v8 = vpop.eup %2301 }
0x2797   :  { %v1639_v10 = vadd.f32 1.0, %v2302_v8 }
0x2799   :  { %2303 = vrcp.f32 %v1639_v10 }
0x27a3   :  { %v2304_v11 = vpop.eup %2303 }
0x27a4   :  { %v1646_v15 = vmul.f32 %v2304_v11, %v1644_v14 }
0x2807   :  { %v1649_v12 = vpop.permute.xlu0 %1648 }
0x2808   :  { %v1651_v13 = vmul.f32 %v2304_v11, %v1649_v12 }
0x280a   :  { %1653 = vrot.lane.b32.xlu1 %v1651_v13, %s2371_s1 }
0x287c   :  { %v1654_v17 = vpop.permute.xlu1 %1653 }
0x287d   :  { %v1656_v16 = vadd.f32 %v1654_v17, %v1646_v15 }
0x287f   :  { %2305 = vtanh.f32 %v1656_v16  ;;  %v1751_v35 = vrot.slane %v1656_v16, 7 }
0x2889   :  { %v2306_v19 = vpop.eup %2305 }
0x288a   :  { %1659 = vrot.lane.b32.xlu0 %v2306_v19, %s2370_s3 }
0x28fc   :  { %v1660_v18 = vpop.permute.xlu0 %1659 }
0x28fd   :  { %v1662_v21 = vmul.f32 %v2304_v11, %v1660_v18 }
0x28ff   :  { %v1664_v22 = vrot.slane %v1662_v21, 6 }
0x2901   :  { %1665 = vrot.lane.b32.xlu1 %v1664_v22, %s2371_s1 }
0x2973   :  { %v1666_v23 = vpop.permute.xlu1 %1665 }
0x2974   :  { %2077 = vmatmul.mubr.msk.f32.vlgmr.msra.gmra.mrb[14].mxu1 %vm71_vm1, %v1666_v23 }
0x2a47   :  { %v1735_v24 = vpop.f32.mrb[14].mxu1 }
0x2a48   :  { %v1740_v25 = vrot.slane %v1735_v24, 1  ;;  %v2078_v26 = vpop.f32.mrb[15].mxu1 }
0x2a4a   :  { %v1742_v27 = vadd.f32 %v1740_v25, %v2561_v4 }
0x2a4c   :  { %2307 = vtanh.f32 %v1742_v27  ;;  %v1822_v29 = vmul.f32 -1.442695, %v1742_v27 }
0x2a4e   :  { %2309 = vpow2.f32 %v1822_v29 }
0x2a56   :  { %v2308_v28 = vpop.eup %2307 }
0x2a57   :  { %1755 = vrot.lane.b32.xlu0 %v2308_v28, %s2370_s3 }
0x2a58   :  { %v2310_v30 = vpop.eup %2309 }
0x2a59   :  { %v1746_v31 = vadd.f32 1.0, %v2310_v30 }
0x2a5b   :  { %2311 = vrcp.f32 %v1746_v31 }
0x2a65   :  { %v2312_v32 = vpop.eup %2311 }
0x2a66   :  { %v1753_v36 = vmul.f32 %v2312_v32, %v1751_v35 }
0x2ac9   :  { %v1756_v33 = vpop.permute.xlu0 %1755 }
0x2aca   :  { %v1758_v34 = vmul.f32 %v2312_v32, %v1756_v33 }
0x2acc   :  { %1760 = vrot.lane.b32.xlu1 %v1758_v34, %s2371_s1 }
0x2b3e   :  { %v1761_v37 = vpop.permute.xlu1 %1760 }
0x2b3f   :  { %v1763_v38 = vadd.f32 %v1761_v37, %v1753_v36 }
0x2b41   :  { %2313 = vtanh.f32 %v1763_v38 }
0x2b4b   :  { %v2314_v4 = vpop.eup %2313 }
0x2b4c   :  { %1766 = vrot.lane.b32.xlu0 %v2314_v4, %s2370_s3 }
0x2bbe   :  { %v1767_v39 = vpop.permute.xlu0 %1766 }
0x2bbf   :  { %v1769_v40 = vmul.f32 %v2312_v32, %v1767_v39 }
0x2bc1   :  { %1771 = vrot.lane.b32.xlu1 %v1769_v40, %s2371_s1 }
0x2c33   :  { %v1772_v41 = vpop.permute.xlu1 %1771 }
0x2c34   :  { %1775 = vst.msk [vmem:[#allocation5 - $0x7] sm:$0x80] %vm1774_vm2, %v1772_v41 }
0x2c35   :  { %2348 = shalt.err (!%p2345_p12)
}
0x2c36   :  { %s2349_s20 = scalar_lea.hbm %s2655_s5, 16 }
0x2c37   :  { %p2350_p13 = scmp.ne.s32.totalorder %s2655_s5, %s2349_s20  ;;  %p2353_p0 = scmp.lt.u32.totalorder %s2349_s20, %s2655_s5 }
0x2c39   :  { %p2355_p1 = pnand %p2353_p0, %p2350_p13 }
0x2c3b   :  { %2358 = shalt.err (!%p2355_p1)
}
0x2c3c   :  { %1785 = dma.vmem_to_hbm [thread:$0]  %s1783_s15, 16, %s2655_s5, [#allocation4]  }
0x2c3d   :  { %2361 = dma.done.wait [#allocation4], 16  }
0x2c3e   :  { %2362 = vsyncadd [#allocation4], 4294967280 }
0x2c3f   :  { %1789 = vsyncpa [#allocation3], 1 }
0x2c40   :  { %1790 = vsyncpa [#allocation4], 1 }

</bundles_post_ra>
